<compile_context>
chip_gen: v7x
topology: tpu7x:2x2x1
jax: 0.10.0
libtpu: 0.0.40
codegen_flags: <defaults>
</compile_context>

<pallas_src>
from functools import partial

import jax
import jax.numpy as jnp
from jax.experimental import pallas as pl
from jax.experimental.pallas import tpu as pltpu

N_OUT = 100  # `N` in the PyTorch script (fc output width)


def lstm_fc_kernel(
    x_ref,       # (T*Bp, I)   f32 VMEM, time-major, batch padded to Bp
    wih0_ref,    # (I, 4H)     g columns pre-scaled by 2
    b0_ref,      # (1, 4H)     b_ih0 + b_hh0, g entries pre-scaled by 2
    wstep_ref,   # (2H, 8H)    [ [W_ih1;W_hh1] | [W_hh0;0] ], g cols scaled
    b1_ref,      # (1, 4H)     b_ih1 + b_hh1, g entries pre-scaled by 2
    wfc_ref,     # (H, Np)     fc weight, zero-padded to Np=128 lanes
    bfc_ref,     # (1, Np)
    o_ref,       # (Bp, Np)
    *,
    seq_len,     # static T
):
    T = seq_len
    Bp = o_ref.shape[0]
    H4 = b0_ref.shape[1]
    H = H4 // 4

    wstep = wstep_ref[...]                                   # (2H, 8H)

    # Loop-invariant broadcast hoisted out of the unrolled loop.
    b1b = jnp.broadcast_to(b1_ref[...], (Bp, H4))

    # Hoisted layer-0 input projection: ONE matmul, off the recurrence chain.
    gx0 = (jnp.dot(x_ref[...], wih0_ref[...], preferred_element_type=jnp.float32)
           + b0_ref[...])                                    # (T*Bp, 4H)

    def gate_act(gates):
        # One full-vreg sigmoid over all 4H lanes (PyTorch gate order i,f,g,o).
        # g's preactivation was pre-scaled by 2 in the weights/bias, so
        # tanh(x) = 2*sigmoid(2x) - 1 is a cheap VPU fma on the sigmoid output.
        sg = jax.nn.sigmoid(gates)
        i_g = sg[:, 0 * H:1 * H]
        f_g = sg[:, 1 * H:2 * H]
        g_g = 2.0 * sg[:, 2 * H:3 * H] - 1.0
        o_g = sg[:, 3 * H:4 * H]
        return i_g, f_g, g_g, o_g

    h1 = jnp.zeros((Bp, H), jnp.float32)
    c0 = jnp.zeros((Bp, H), jnp.float32)
    c1 = jnp.zeros((Bp, H), jnp.float32)
    hh0 = jnp.zeros((Bp, H4), jnp.float32)   # carried h0_{t-1} @ W_hh0

    # Static unroll over the (small, fixed) sequence length.
    for t in range(T):
        # layer 0: x part precomputed, recurrent part carried from the previous
        # step's combined matmul -> zero matmuls on this side of the chain.
        g0 = gx0[t * Bp:(t + 1) * Bp] + hh0
        i0, f0, gg0, o0 = gate_act(g0)
        c0 = f0 * c0 + i0 * gg0
        h0 = o0 * jnp.tanh(c0)

        # TODO(synk): inter-layer dropout (p=0.2, train mode) omitted; eval semantics.

        # Single combined matmul per step (256-lane output = 2 vregs):
        #   lanes 0:4H  -> layer-1 gates for step t
        #   lanes 4H:8H -> h0_t @ W_hh0, layer-0 recurrent part for step t+1
        comb = jnp.dot(jnp.concatenate([h0, h1], axis=1), wstep,
                       preferred_element_type=jnp.float32)   # (Bp, 8H)
        hh0 = comb[:, H4:]
        g1 = comb[:, :H4] + b1b
        i1, f1, gg1, o1 = gate_act(g1)
        c1 = f1 * c1 + i1 * gg1
        h1 = o1 * jnp.tanh(c1)

    # fc(out[:, -1, :]) with fc width padded to 128 -> lane-dense, unmasked store.
    o_ref[...] = (jnp.dot(h1, wfc_ref[...], preferred_element_type=jnp.float32)
                  + bfc_ref[...])


def make_params(key, input_size, hidden_size):
    """PyTorch-style init: LSTM & Linear params ~ U(-1/sqrt(H), 1/sqrt(H))."""
    H, I = hidden_size, input_size
    k = 1.0 / (H ** 0.5)
    keys = jax.random.split(key, 10)
    u = lambda kk, shape, b: jax.random.uniform(kk, shape, jnp.float32, -b, b)

    w_ih0 = u(keys[0], (4 * H, I), k)
    w_hh0 = u(keys[1], (4 * H, H), k)
    b0 = u(keys[2], (4 * H,), k) + u(keys[3], (4 * H,), k)   # b_ih + b_hh
    w_ih1 = u(keys[4], (4 * H, H), k)
    w_hh1 = u(keys[5], (4 * H, H), k)
    b1 = u(keys[6], (4 * H,), k) + u(keys[7], (4 * H,), k)
    w_fc = u(keys[8], (N_OUT, H), k)
    b_fc = u(keys[9], (N_OUT,), k)

    return dict(w_ih0=w_ih0, w_hh0=w_hh0, b0=b0,
                w_ih1=w_ih1, w_hh1=w_hh1, b1=b1,
                w_fc=w_fc, b_fc=b_fc)


def lstm_model_forward(x, params):
    """x: (B, T, I) float32 (torch batch_first layout). Returns (B, N_OUT)."""
    B, T, I = x.shape
    H = params["w_hh0"].shape[1]
    H4 = 4 * H
    Bp = max(8, ((B + 7) // 8) * 8)          # pad batch to f32 sublane count
    Np = ((N_OUT + 127) // 128) * 128        # pad fc width to lane count

    # Glue / layout prep (plain JAX): time-major, batch-padded, flattened.
    x_tbi = jnp.transpose(x.astype(jnp.float32), (1, 0, 2))          # (T, B, I)
    x_pad = jnp.zeros((T, Bp, I), jnp.float32).at[:, :B, :].set(x_tbi)
    x_flat = x_pad.reshape(T * Bp, I)

    # Pre-scale the g-gate columns / bias entries by 2 so the kernel can
    # recover tanh(x) = 2*sigmoid(2x) - 1 from its single full-width sigmoid.
    def scale_g_cols(w_t):   # w_t: (*, 4H), PyTorch gate order i,f,g,o
        return w_t.at[:, 2 * H:3 * H].multiply(2.0)

    def scale_g_bias(b):     # b: (4H,)
        return b.at[2 * H:3 * H].multiply(2.0)

    wih0 = scale_g_cols(params["w_ih0"].T.astype(jnp.float32))       # (I, 4H)
    whh0 = scale_g_cols(params["w_hh0"].T.astype(jnp.float32))       # (H, 4H)
    b0 = scale_g_bias(params["b0"].astype(jnp.float32)).reshape(1, H4)
    w1 = scale_g_cols(jnp.concatenate(
        [params["w_ih1"].T, params["w_hh1"].T], 0).astype(jnp.float32))  # (2H, 4H)
    b1 = scale_g_bias(params["b1"].astype(jnp.float32)).reshape(1, H4)

    # Combined per-step RHS (2H, 8H): lanes 0:4H give layer-1 gates, lanes
    # 4H:8H give h0 @ W_hh0 (h1 rows are zero there).
    wstep = jnp.concatenate(
        [w1, jnp.concatenate([whh0, jnp.zeros((H, H4), jnp.float32)], 0)],
        axis=1)                                                       # (2H, 8H)

    wfc = jnp.zeros((H, Np), jnp.float32).at[:, :N_OUT].set(params["w_fc"].T)
    bfc = jnp.zeros((1, Np), jnp.float32).at[:, :N_OUT].set(
        params["b_fc"].reshape(1, N_OUT))

    VMEM = pltpu.MemorySpace.VMEM
    out = pl.pallas_call(
        partial(lstm_fc_kernel, seq_len=T),
        out_shape=jax.ShapeDtypeStruct((Bp, Np), jnp.float32),
        in_specs=[pl.BlockSpec(memory_space=VMEM)] * 7,
        out_specs=pl.BlockSpec(memory_space=VMEM),
    )(x_flat, wih0, b0, wstep, b1, wfc, bfc)

    return out[:B, :N_OUT]


def lstm_model_reference(x, params):
    """Pure-JAX reference (same math, unfused, standard LSTM equations)."""
    B, T, I = x.shape
    H = params["w_hh0"].shape[1]

    def cell(x_t, h, c, wih, whh, b):
        gates = x_t @ wih.T + h @ whh.T + b
        i = jax.nn.sigmoid(gates[:, 0 * H:1 * H])
        f = jax.nn.sigmoid(gates[:, 1 * H:2 * H])
        g = jnp.tanh(gates[:, 2 * H:3 * H])
        o = jax.nn.sigmoid(gates[:, 3 * H:4 * H])
        c = f * c + i * g
        h = o * jnp.tanh(c)
        return h, c

    h0 = c0 = h1 = c1 = jnp.zeros((B, H), jnp.float32)
    for t in range(T):
        h0, c0 = cell(x[:, t, :], h0, c0, params["w_ih0"], params["w_hh0"], params["b0"])
        h1, c1 = cell(h0, h1, c1, params["w_ih1"], params["w_hh1"], params["b1"])
    return h1 @ params["w_fc"].T + params["b_fc"]


if __name__ == "__main__":
    # Small shapes consistent with the module: input_size=4, hidden=32,
    # num_layers=2, seq=8, batch=2.
    B, T, I, H = 2, 8, 4, 32

    root = jax.random.PRNGKey(0)
    k_x, k_params = jax.random.split(root)

    x = jax.random.normal(k_x, (B, T, I), jnp.float32)
    params = make_params(k_params, input_size=I, hidden_size=H)

    y = lstm_model_forward(x, params)
    y = jax.block_until_ready(y)
    y_ref = lstm_model_reference(x, params)

    assert y.shape == (B, N_OUT) and y.dtype == jnp.float32
    assert bool(jnp.all(jnp.isfinite(y)))
    assert bool(jnp.allclose(y, y_ref, atol=2e-4, rtol=1e-3))
    print("KERNEL_OK")
</pallas_src>

<mosaic_0001>
module attributes {stable_mosaic.version = 11 : i64} {
  func.func @lstm_fc_kernel(%arg0: memref<64x4xf32, #tpu.memory_space<vmem>>, %arg1: memref<4x128xf32, #tpu.memory_space<vmem>>, %arg2: memref<1x128xf32, #tpu.memory_space<vmem>>, %arg3: memref<64x256xf32, #tpu.memory_space<vmem>>, %arg4: memref<1x128xf32, #tpu.memory_space<vmem>>, %arg5: memref<32x128xf32, #tpu.memory_space<vmem>>, %arg6: memref<1x128xf32, #tpu.memory_space<vmem>>, %arg7: memref<8x128xf32, #tpu.memory_space<vmem>>) attributes {dimension_semantics = [], scalar_prefetch = 0 : i64, scratch_operands = 0 : i64, tpu.core_type = #tpu.core_type<tc>} {
    %c0 = arith.constant 0 : index
    %c0_0 = arith.constant 0 : index
    %0 = vector.load %arg3[%c0, %c0_0] : memref<64x256xf32, #tpu.memory_space<vmem>>, vector<64x256xf32>
    %c0_1 = arith.constant 0 : index
    %c0_2 = arith.constant 0 : index
    %1 = vector.load %arg4[%c0_1, %c0_2] : memref<1x128xf32, #tpu.memory_space<vmem>>, vector<1x128xf32>
    %2 = vector.shape_cast %1 : vector<1x128xf32> to vector<1x128xf32>
    %3 = vector.broadcast %2 : vector<1x128xf32> to vector<8x128xf32>
    %c0_3 = arith.constant 0 : index
    %c0_4 = arith.constant 0 : index
    %4 = vector.load %arg0[%c0_3, %c0_4] : memref<64x4xf32, #tpu.memory_space<vmem>>, vector<64x4xf32>
    %c0_5 = arith.constant 0 : index
    %c0_6 = arith.constant 0 : index
    %5 = vector.load %arg1[%c0_5, %c0_6] : memref<4x128xf32, #tpu.memory_space<vmem>>, vector<4x128xf32>
    %cst = arith.constant dense<0.000000e+00> : vector<64x128xf32>
    %6 = tpu.matmul %4, %5, %cst {dimension_numbers = #tpu.dot_dimension_numbers<[1], [0], [0], [1], [0, 0, 1, 1], [], []>} : vector<64x4xf32>, vector<4x128xf32>, vector<64x128xf32> -> vector<64x128xf32>
    %c0_7 = arith.constant 0 : index
    %c0_8 = arith.constant 0 : index
    %7 = vector.load %arg2[%c0_7, %c0_8] : memref<1x128xf32, #tpu.memory_space<vmem>>, vector<1x128xf32>
    %8 = vector.broadcast %7 : vector<1x128xf32> to vector<64x128xf32>
    %9 = arith.addf %6, %8 : vector<64x128xf32>
    %cst_9 = arith.constant 0.000000e+00 : f32
    %10 = vector.broadcast %cst_9 : f32 to vector<8x32xf32>
    %cst_10 = arith.constant 0.000000e+00 : f32
    %11 = vector.broadcast %cst_10 : f32 to vector<8x32xf32>
    %cst_11 = arith.constant 0.000000e+00 : f32
    %12 = vector.broadcast %cst_11 : f32 to vector<8x32xf32>
    %cst_12 = arith.constant 0.000000e+00 : f32
    %13 = vector.broadcast %cst_12 : f32 to vector<8x128xf32>
    %14 = vector.extract_strided_slice %9 {offsets = [0, 0], sizes = [8, 128], strides = [1, 1]} : vector<64x128xf32> to vector<8x128xf32>
    %15 = arith.addf %14, %13 : vector<8x128xf32>
    %16 = arith.negf %15 : vector<8x128xf32>
    %17 = math.exp %16 : vector<8x128xf32>
    %cst_13 = arith.constant 1.000000e+00 : f32
    %18 = vector.broadcast %cst_13 : f32 to vector<8x128xf32>
    %19 = arith.addf %18, %17 : vector<8x128xf32>
    %20 = arith.divf %18, %19 : vector<8x128xf32>
    %21 = vector.extract_strided_slice %20 {offsets = [0, 0], sizes = [8, 32], strides = [1, 1]} : vector<8x128xf32> to vector<8x32xf32>
    %22 = vector.extract_strided_slice %20 {offsets = [0, 32], sizes = [8, 32], strides = [1, 1]} : vector<8x128xf32> to vector<8x32xf32>
    %23 = vector.extract_strided_slice %20 {offsets = [0, 64], sizes = [8, 32], strides = [1, 1]} : vector<8x128xf32> to vector<8x32xf32>
    %cst_14 = arith.constant 2.000000e+00 : f32
    %24 = vector.broadcast %cst_14 : f32 to vector<8x32xf32>
    %25 = arith.mulf %24, %23 : vector<8x32xf32>
    %cst_15 = arith.constant 1.000000e+00 : f32
    %26 = vector.broadcast %cst_15 : f32 to vector<8x32xf32>
    %27 = arith.subf %25, %26 : vector<8x32xf32>
    %28 = vector.extract_strided_slice %20 {offsets = [0, 96], sizes = [8, 32], strides = [1, 1]} : vector<8x128xf32> to vector<8x32xf32>
    %29 = arith.mulf %22, %11 : vector<8x32xf32>
    %30 = arith.mulf %21, %27 : vector<8x32xf32>
    %31 = arith.addf %29, %30 : vector<8x32xf32>
    %32 = math.tanh %31 : vector<8x32xf32>
    %33 = arith.mulf %28, %32 : vector<8x32xf32>
    %34 = tpu.concatenate %33, %10 in 1 : vector<8x32xf32>, vector<8x32xf32> -> vector<8x64xf32>
    %cst_16 = arith.constant dense<0.000000e+00> : vector<8x256xf32>
    %35 = tpu.matmul %34, %0, %cst_16 {dimension_numbers = #tpu.dot_dimension_numbers<[1], [0], [0], [1], [0, 0, 1, 1], [], []>} : vector<8x64xf32>, vector<64x256xf32>, vector<8x256xf32> -> vector<8x256xf32>
    %36 = vector.extract_strided_slice %35 {offsets = [0, 128], sizes = [8, 128], strides = [1, 1]} : vector<8x256xf32> to vector<8x128xf32>
    %37 = vector.extract_strided_slice %35 {offsets = [0, 0], sizes = [8, 128], strides = [1, 1]} : vector<8x256xf32> to vector<8x128xf32>
    %38 = arith.addf %37, %3 : vector<8x128xf32>
    %39 = arith.negf %38 : vector<8x128xf32>
    %40 = math.exp %39 : vector<8x128xf32>
    %cst_17 = arith.constant 1.000000e+00 : f32
    %41 = vector.broadcast %cst_17 : f32 to vector<8x128xf32>
    %42 = arith.addf %41, %40 : vector<8x128xf32>
    %43 = arith.divf %41, %42 : vector<8x128xf32>
    %44 = vector.extract_strided_slice %43 {offsets = [0, 0], sizes = [8, 32], strides = [1, 1]} : vector<8x128xf32> to vector<8x32xf32>
    %45 = vector.extract_strided_slice %43 {offsets = [0, 32], sizes = [8, 32], strides = [1, 1]} : vector<8x128xf32> to vector<8x32xf32>
    %46 = vector.extract_strided_slice %43 {offsets = [0, 64], sizes = [8, 32], strides = [1, 1]} : vector<8x128xf32> to vector<8x32xf32>
    %cst_18 = arith.constant 2.000000e+00 : f32
    %47 = vector.broadcast %cst_18 : f32 to vector<8x32xf32>
    %48 = arith.mulf %47, %46 : vector<8x32xf32>
    %cst_19 = arith.constant 1.000000e+00 : f32
    %49 = vector.broadcast %cst_19 : f32 to vector<8x32xf32>
    %50 = arith.subf %48, %49 : vector<8x32xf32>
    %51 = vector.extract_strided_slice %43 {offsets = [0, 96], sizes = [8, 32], strides = [1, 1]} : vector<8x128xf32> to vector<8x32xf32>
    %52 = arith.mulf %45, %12 : vector<8x32xf32>
    %53 = arith.mulf %44, %50 : vector<8x32xf32>
    %54 = arith.addf %52, %53 : vector<8x32xf32>
    %55 = math.tanh %54 : vector<8x32xf32>
    %56 = arith.mulf %51, %55 : vector<8x32xf32>
    %57 = vector.extract_strided_slice %9 {offsets = [8, 0], sizes = [8, 128], strides = [1, 1]} : vector<64x128xf32> to vector<8x128xf32>
    %58 = arith.addf %57, %36 : vector<8x128xf32>
    %59 = arith.negf %58 : vector<8x128xf32>
    %60 = math.exp %59 : vector<8x128xf32>
    %cst_20 = arith.constant 1.000000e+00 : f32
    %61 = vector.broadcast %cst_20 : f32 to vector<8x128xf32>
    %62 = arith.addf %61, %60 : vector<8x128xf32>
    %63 = arith.divf %61, %62 : vector<8x128xf32>
    %64 = vector.extract_strided_slice %63 {offsets = [0, 0], sizes = [8, 32], strides = [1, 1]} : vector<8x128xf32> to vector<8x32xf32>
    %65 = vector.extract_strided_slice %63 {offsets = [0, 32], sizes = [8, 32], strides = [1, 1]} : vector<8x128xf32> to vector<8x32xf32>
    %66 = vector.extract_strided_slice %63 {offsets = [0, 64], sizes = [8, 32], strides = [1, 1]} : vector<8x128xf32> to vector<8x32xf32>
    %cst_21 = arith.constant 2.000000e+00 : f32
    %67 = vector.broadcast %cst_21 : f32 to vector<8x32xf32>
    %68 = arith.mulf %67, %66 : vector<8x32xf32>
    %cst_22 = arith.constant 1.000000e+00 : f32
    %69 = vector.broadcast %cst_22 : f32 to vector<8x32xf32>
    %70 = arith.subf %68, %69 : vector<8x32xf32>
    %71 = vector.extract_strided_slice %63 {offsets = [0, 96], sizes = [8, 32], strides = [1, 1]} : vector<8x128xf32> to vector<8x32xf32>
    %72 = arith.mulf %65, %31 : vector<8x32xf32>
    %73 = arith.mulf %64, %70 : vector<8x32xf32>
    %74 = arith.addf %72, %73 : vector<8x32xf32>
    %75 = math.tanh %74 : vector<8x32xf32>
    %76 = arith.mulf %71, %75 : vector<8x32xf32>
    %77 = tpu.concatenate %76, %56 in 1 : vector<8x32xf32>, vector<8x32xf32> -> vector<8x64xf32>
    %cst_23 = arith.constant dense<0.000000e+00> : vector<8x256xf32>
    %78 = tpu.matmul %77, %0, %cst_23 {dimension_numbers = #tpu.dot_dimension_numbers<[1], [0], [0], [1], [0, 0, 1, 1], [], []>} : vector<8x64xf32>, vector<64x256xf32>, vector<8x256xf32> -> vector<8x256xf32>
    %79 = vector.extract_strided_slice %78 {offsets = [0, 128], sizes = [8, 128], strides = [1, 1]} : vector<8x256xf32> to vector<8x128xf32>
    %80 = vector.extract_strided_slice %78 {offsets = [0, 0], sizes = [8, 128], strides = [1, 1]} : vector<8x256xf32> to vector<8x128xf32>
    %81 = arith.addf %80, %3 : vector<8x128xf32>
    %82 = arith.negf %81 : vector<8x128xf32>
    %83 = math.exp %82 : vector<8x128xf32>
    %cst_24 = arith.constant 1.000000e+00 : f32
    %84 = vector.broadcast %cst_24 : f32 to vector<8x128xf32>
    %85 = arith.addf %84, %83 : vector<8x128xf32>
    %86 = arith.divf %84, %85 : vector<8x128xf32>
    %87 = vector.extract_strided_slice %86 {offsets = [0, 0], sizes = [8, 32], strides = [1, 1]} : vector<8x128xf32> to vector<8x32xf32>
    %88 = vector.extract_strided_slice %86 {offsets = [0, 32], sizes = [8, 32], strides = [1, 1]} : vector<8x128xf32> to vector<8x32xf32>
    %89 = vector.extract_strided_slice %86 {offsets = [0, 64], sizes = [8, 32], strides = [1, 1]} : vector<8x128xf32> to vector<8x32xf32>
    %cst_25 = arith.constant 2.000000e+00 : f32
    %90 = vector.broadcast %cst_25 : f32 to vector<8x32xf32>
    %91 = arith.mulf %90, %89 : vector<8x32xf32>
    %cst_26 = arith.constant 1.000000e+00 : f32
    %92 = vector.broadcast %cst_26 : f32 to vector<8x32xf32>
    %93 = arith.subf %91, %92 : vector<8x32xf32>
    %94 = vector.extract_strided_slice %86 {offsets = [0, 96], sizes = [8, 32], strides = [1, 1]} : vector<8x128xf32> to vector<8x32xf32>
    %95 = arith.mulf %88, %54 : vector<8x32xf32>
    %96 = arith.mulf %87, %93 : vector<8x32xf32>
    %97 = arith.addf %95, %96 : vector<8x32xf32>
    %98 = math.tanh %97 : vector<8x32xf32>
    %99 = arith.mulf %94, %98 : vector<8x32xf32>
    %100 = vector.extract_strided_slice %9 {offsets = [16, 0], sizes = [8, 128], strides = [1, 1]} : vector<64x128xf32> to vector<8x128xf32>
    %101 = arith.addf %100, %79 : vector<8x128xf32>
    %102 = arith.negf %101 : vector<8x128xf32>
    %103 = math.exp %102 : vector<8x128xf32>
    %cst_27 = arith.constant 1.000000e+00 : f32
    %104 = vector.broadcast %cst_27 : f32 to vector<8x128xf32>
    %105 = arith.addf %104, %103 : vector<8x128xf32>
    %106 = arith.divf %104, %105 : vector<8x128xf32>
    %107 = vector.extract_strided_slice %106 {offsets = [0, 0], sizes = [8, 32], strides = [1, 1]} : vector<8x128xf32> to vector<8x32xf32>
    %108 = vector.extract_strided_slice %106 {offsets = [0, 32], sizes = [8, 32], strides = [1, 1]} : vector<8x128xf32> to vector<8x32xf32>
    %109 = vector.extract_strided_slice %106 {offsets = [0, 64], sizes = [8, 32], strides = [1, 1]} : vector<8x128xf32> to vector<8x32xf32>
    %cst_28 = arith.constant 2.000000e+00 : f32
    %110 = vector.broadcast %cst_28 : f32 to vector<8x32xf32>
    %111 = arith.mulf %110, %109 : vector<8x32xf32>
    %cst_29 = arith.constant 1.000000e+00 : f32
    %112 = vector.broadcast %cst_29 : f32 to vector<8x32xf32>
    %113 = arith.subf %111, %112 : vector<8x32xf32>
    %114 = vector.extract_strided_slice %106 {offsets = [0, 96], sizes = [8, 32], strides = [1, 1]} : vector<8x128xf32> to vector<8x32xf32>
    %115 = arith.mulf %108, %74 : vector<8x32xf32>
    %116 = arith.mulf %107, %113 : vector<8x32xf32>
    %117 = arith.addf %115, %116 : vector<8x32xf32>
    %118 = math.tanh %117 : vector<8x32xf32>
    %119 = arith.mulf %114, %118 : vector<8x32xf32>
    %120 = tpu.concatenate %119, %99 in 1 : vector<8x32xf32>, vector<8x32xf32> -> vector<8x64xf32>
    %cst_30 = arith.constant dense<0.000000e+00> : vector<8x256xf32>
    %121 = tpu.matmul %120, %0, %cst_30 {dimension_numbers = #tpu.dot_dimension_numbers<[1], [0], [0], [1], [0, 0, 1, 1], [], []>} : vector<8x64xf32>, vector<64x256xf32>, vector<8x256xf32> -> vector<8x256xf32>
    %122 = vector.extract_strided_slice %121 {offsets = [0, 128], sizes = [8, 128], strides = [1, 1]} : vector<8x256xf32> to vector<8x128xf32>
    %123 = vector.extract_strided_slice %121 {offsets = [0, 0], sizes = [8, 128], strides = [1, 1]} : vector<8x256xf32> to vector<8x128xf32>
    %124 = arith.addf %123, %3 : vector<8x128xf32>
    %125 = arith.negf %124 : vector<8x128xf32>
    %126 = math.exp %125 : vector<8x128xf32>
    %cst_31 = arith.constant 1.000000e+00 : f32
    %127 = vector.broadcast %cst_31 : f32 to vector<8x128xf32>
    %128 = arith.addf %127, %126 : vector<8x128xf32>
    %129 = arith.divf %127, %128 : vector<8x128xf32>
    %130 = vector.extract_strided_slice %129 {offsets = [0, 0], sizes = [8, 32], strides = [1, 1]} : vector<8x128xf32> to vector<8x32xf32>
    %131 = vector.extract_strided_slice %129 {offsets = [0, 32], sizes = [8, 32], strides = [1, 1]} : vector<8x128xf32> to vector<8x32xf32>
    %132 = vector.extract_strided_slice %129 {offsets = [0, 64], sizes = [8, 32], strides = [1, 1]} : vector<8x128xf32> to vector<8x32xf32>
    %cst_32 = arith.constant 2.000000e+00 : f32
    %133 = vector.broadcast %cst_32 : f32 to vector<8x32xf32>
    %134 = arith.mulf %133, %132 : vector<8x32xf32>
    %cst_33 = arith.constant 1.000000e+00 : f32
    %135 = vector.broadcast %cst_33 : f32 to vector<8x32xf32>
    %136 = arith.subf %134, %135 : vector<8x32xf32>
    %137 = vector.extract_strided_slice %129 {offsets = [0, 96], sizes = [8, 32], strides = [1, 1]} : vector<8x128xf32> to vector<8x32xf32>
    %138 = arith.mulf %131, %97 : vector<8x32xf32>
    %139 = arith.mulf %130, %136 : vector<8x32xf32>
    %140 = arith.addf %138, %139 : vector<8x32xf32>
    %141 = math.tanh %140 : vector<8x32xf32>
    %142 = arith.mulf %137, %141 : vector<8x32xf32>
    %143 = vector.extract_strided_slice %9 {offsets = [24, 0], sizes = [8, 128], strides = [1, 1]} : vector<64x128xf32> to vector<8x128xf32>
    %144 = arith.addf %143, %122 : vector<8x128xf32>
    %145 = arith.negf %144 : vector<8x128xf32>
    %146 = math.exp %145 : vector<8x128xf32>
    %cst_34 = arith.constant 1.000000e+00 : f32
    %147 = vector.broadcast %cst_34 : f32 to vector<8x128xf32>
    %148 = arith.addf %147, %146 : vector<8x128xf32>
    %149 = arith.divf %147, %148 : vector<8x128xf32>
    %150 = vector.extract_strided_slice %149 {offsets = [0, 0], sizes = [8, 32], strides = [1, 1]} : vector<8x128xf32> to vector<8x32xf32>
    %151 = vector.extract_strided_slice %149 {offsets = [0, 32], sizes = [8, 32], strides = [1, 1]} : vector<8x128xf32> to vector<8x32xf32>
    %152 = vector.extract_strided_slice %149 {offsets = [0, 64], sizes = [8, 32], strides = [1, 1]} : vector<8x128xf32> to vector<8x32xf32>
    %cst_35 = arith.constant 2.000000e+00 : f32
    %153 = vector.broadcast %cst_35 : f32 to vector<8x32xf32>
    %154 = arith.mulf %153, %152 : vector<8x32xf32>
    %cst_36 = arith.constant 1.000000e+00 : f32
    %155 = vector.broadcast %cst_36 : f32 to vector<8x32xf32>
    %156 = arith.subf %154, %155 : vector<8x32xf32>
    %157 = vector.extract_strided_slice %149 {offsets = [0, 96], sizes = [8, 32], strides = [1, 1]} : vector<8x128xf32> to vector<8x32xf32>
    %158 = arith.mulf %151, %117 : vector<8x32xf32>
    %159 = arith.mulf %150, %156 : vector<8x32xf32>
    %160 = arith.addf %158, %159 : vector<8x32xf32>
    %161 = math.tanh %160 : vector<8x32xf32>
    %162 = arith.mulf %157, %161 : vector<8x32xf32>
    %163 = tpu.concatenate %162, %142 in 1 : vector<8x32xf32>, vector<8x32xf32> -> vector<8x64xf32>
    %cst_37 = arith.constant dense<0.000000e+00> : vector<8x256xf32>
    %164 = tpu.matmul %163, %0, %cst_37 {dimension_numbers = #tpu.dot_dimension_numbers<[1], [0], [0], [1], [0, 0, 1, 1], [], []>} : vector<8x64xf32>, vector<64x256xf32>, vector<8x256xf32> -> vector<8x256xf32>
    %165 = vector.extract_strided_slice %164 {offsets = [0, 128], sizes = [8, 128], strides = [1, 1]} : vector<8x256xf32> to vector<8x128xf32>
    %166 = vector.extract_strided_slice %164 {offsets = [0, 0], sizes = [8, 128], strides = [1, 1]} : vector<8x256xf32> to vector<8x128xf32>
    %167 = arith.addf %166, %3 : vector<8x128xf32>
    %168 = arith.negf %167 : vector<8x128xf32>
    %169 = math.exp %168 : vector<8x128xf32>
    %cst_38 = arith.constant 1.000000e+00 : f32
    %170 = vector.broadcast %cst_38 : f32 to vector<8x128xf32>
    %171 = arith.addf %170, %169 : vector<8x128xf32>
    %172 = arith.divf %170, %171 : vector<8x128xf32>
    %173 = vector.extract_strided_slice %172 {offsets = [0, 0], sizes = [8, 32], strides = [1, 1]} : vector<8x128xf32> to vector<8x32xf32>
    %174 = vector.extract_strided_slice %172 {offsets = [0, 32], sizes = [8, 32], strides = [1, 1]} : vector<8x128xf32> to vector<8x32xf32>
    %175 = vector.extract_strided_slice %172 {offsets = [0, 64], sizes = [8, 32], strides = [1, 1]} : vector<8x128xf32> to vector<8x32xf32>
    %cst_39 = arith.constant 2.000000e+00 : f32
    %176 = vector.broadcast %cst_39 : f32 to vector<8x32xf32>
    %177 = arith.mulf %176, %175 : vector<8x32xf32>
    %cst_40 = arith.constant 1.000000e+00 : f32
    %178 = vector.broadcast %cst_40 : f32 to vector<8x32xf32>
    %179 = arith.subf %177, %178 : vector<8x32xf32>
    %180 = vector.extract_strided_slice %172 {offsets = [0, 96], sizes = [8, 32], strides = [1, 1]} : vector<8x128xf32> to vector<8x32xf32>
    %181 = arith.mulf %174, %140 : vector<8x32xf32>
    %182 = arith.mulf %173, %179 : vector<8x32xf32>
    %183 = arith.addf %181, %182 : vector<8x32xf32>
    %184 = math.tanh %183 : vector<8x32xf32>
    %185 = arith.mulf %180, %184 : vector<8x32xf32>
    %186 = vector.extract_strided_slice %9 {offsets = [32, 0], sizes = [8, 128], strides = [1, 1]} : vector<64x128xf32> to vector<8x128xf32>
    %187 = arith.addf %186, %165 : vector<8x128xf32>
    %188 = arith.negf %187 : vector<8x128xf32>
    %189 = math.exp %188 : vector<8x128xf32>
    %cst_41 = arith.constant 1.000000e+00 : f32
    %190 = vector.broadcast %cst_41 : f32 to vector<8x128xf32>
    %191 = arith.addf %190, %189 : vector<8x128xf32>
    %192 = arith.divf %190, %191 : vector<8x128xf32>
    %193 = vector.extract_strided_slice %192 {offsets = [0, 0], sizes = [8, 32], strides = [1, 1]} : vector<8x128xf32> to vector<8x32xf32>
    %194 = vector.extract_strided_slice %192 {offsets = [0, 32], sizes = [8, 32], strides = [1, 1]} : vector<8x128xf32> to vector<8x32xf32>
    %195 = vector.extract_strided_slice %192 {offsets = [0, 64], sizes = [8, 32], strides = [1, 1]} : vector<8x128xf32> to vector<8x32xf32>
    %cst_42 = arith.constant 2.000000e+00 : f32
    %196 = vector.broadcast %cst_42 : f32 to vector<8x32xf32>
    %197 = arith.mulf %196, %195 : vector<8x32xf32>
    %cst_43 = arith.constant 1.000000e+00 : f32
    %198 = vector.broadcast %cst_43 : f32 to vector<8x32xf32>
    %199 = arith.subf %197, %198 : vector<8x32xf32>
    %200 = vector.extract_strided_slice %192 {offsets = [0, 96], sizes = [8, 32], strides = [1, 1]} : vector<8x128xf32> to vector<8x32xf32>
    %201 = arith.mulf %194, %160 : vector<8x32xf32>
    %202 = arith.mulf %193, %199 : vector<8x32xf32>
    %203 = arith.addf %201, %202 : vector<8x32xf32>
    %204 = math.tanh %203 : vector<8x32xf32>
    %205 = arith.mulf %200, %204 : vector<8x32xf32>
    %206 = tpu.concatenate %205, %185 in 1 : vector<8x32xf32>, vector<8x32xf32> -> vector<8x64xf32>
    %cst_44 = arith.constant dense<0.000000e+00> : vector<8x256xf32>
    %207 = tpu.matmul %206, %0, %cst_44 {dimension_numbers = #tpu.dot_dimension_numbers<[1], [0], [0], [1], [0, 0, 1, 1], [], []>} : vector<8x64xf32>, vector<64x256xf32>, vector<8x256xf32> -> vector<8x256xf32>
    %208 = vector.extract_strided_slice %207 {offsets = [0, 128], sizes = [8, 128], strides = [1, 1]} : vector<8x256xf32> to vector<8x128xf32>
    %209 = vector.extract_strided_slice %207 {offsets = [0, 0], sizes = [8, 128], strides = [1, 1]} : vector<8x256xf32> to vector<8x128xf32>
    %210 = arith.addf %209, %3 : vector<8x128xf32>
    %211 = arith.negf %210 : vector<8x128xf32>
    %212 = math.exp %211 : vector<8x128xf32>
    %cst_45 = arith.constant 1.000000e+00 : f32
    %213 = vector.broadcast %cst_45 : f32 to vector<8x128xf32>
    %214 = arith.addf %213, %212 : vector<8x128xf32>
    %215 = arith.divf %213, %214 : vector<8x128xf32>
    %216 = vector.extract_strided_slice %215 {offsets = [0, 0], sizes = [8, 32], strides = [1, 1]} : vector<8x128xf32> to vector<8x32xf32>
    %217 = vector.extract_strided_slice %215 {offsets = [0, 32], sizes = [8, 32], strides = [1, 1]} : vector<8x128xf32> to vector<8x32xf32>
    %218 = vector.extract_strided_slice %215 {offsets = [0, 64], sizes = [8, 32], strides = [1, 1]} : vector<8x128xf32> to vector<8x32xf32>
    %cst_46 = arith.constant 2.000000e+00 : f32
    %219 = vector.broadcast %cst_46 : f32 to vector<8x32xf32>
    %220 = arith.mulf %219, %218 : vector<8x32xf32>
    %cst_47 = arith.constant 1.000000e+00 : f32
    %221 = vector.broadcast %cst_47 : f32 to vector<8x32xf32>
    %222 = arith.subf %220, %221 : vector<8x32xf32>
    %223 = vector.extract_strided_slice %215 {offsets = [0, 96], sizes = [8, 32], strides = [1, 1]} : vector<8x128xf32> to vector<8x32xf32>
    %224 = arith.mulf %217, %183 : vector<8x32xf32>
    %225 = arith.mulf %216, %222 : vector<8x32xf32>
    %226 = arith.addf %224, %225 : vector<8x32xf32>
    %227 = math.tanh %226 : vector<8x32xf32>
    %228 = arith.mulf %223, %227 : vector<8x32xf32>
    %229 = vector.extract_strided_slice %9 {offsets = [40, 0], sizes = [8, 128], strides = [1, 1]} : vector<64x128xf32> to vector<8x128xf32>
    %230 = arith.addf %229, %208 : vector<8x128xf32>
    %231 = arith.negf %230 : vector<8x128xf32>
    %232 = math.exp %231 : vector<8x128xf32>
    %cst_48 = arith.constant 1.000000e+00 : f32
    %233 = vector.broadcast %cst_48 : f32 to vector<8x128xf32>
    %234 = arith.addf %233, %232 : vector<8x128xf32>
    %235 = arith.divf %233, %234 : vector<8x128xf32>
    %236 = vector.extract_strided_slice %235 {offsets = [0, 0], sizes = [8, 32], strides = [1, 1]} : vector<8x128xf32> to vector<8x32xf32>
    %237 = vector.extract_strided_slice %235 {offsets = [0, 32], sizes = [8, 32], strides = [1, 1]} : vector<8x128xf32> to vector<8x32xf32>
    %238 = vector.extract_strided_slice %235 {offsets = [0, 64], sizes = [8, 32], strides = [1, 1]} : vector<8x128xf32> to vector<8x32xf32>
    %cst_49 = arith.constant 2.000000e+00 : f32
    %239 = vector.broadcast %cst_49 : f32 to vector<8x32xf32>
    %240 = arith.mulf %239, %238 : vector<8x32xf32>
    %cst_50 = arith.constant 1.000000e+00 : f32
    %241 = vector.broadcast %cst_50 : f32 to vector<8x32xf32>
    %242 = arith.subf %240, %241 : vector<8x32xf32>
    %243 = vector.extract_strided_slice %235 {offsets = [0, 96], sizes = [8, 32], strides = [1, 1]} : vector<8x128xf32> to vector<8x32xf32>
    %244 = arith.mulf %237, %203 : vector<8x32xf32>
    %245 = arith.mulf %236, %242 : vector<8x32xf32>
    %246 = arith.addf %244, %245 : vector<8x32xf32>
    %247 = math.tanh %246 : vector<8x32xf32>
    %248 = arith.mulf %243, %247 : vector<8x32xf32>
    %249 = tpu.concatenate %248, %228 in 1 : vector<8x32xf32>, vector<8x32xf32> -> vector<8x64xf32>
    %cst_51 = arith.constant dense<0.000000e+00> : vector<8x256xf32>
    %250 = tpu.matmul %249, %0, %cst_51 {dimension_numbers = #tpu.dot_dimension_numbers<[1], [0], [0], [1], [0, 0, 1, 1], [], []>} : vector<8x64xf32>, vector<64x256xf32>, vector<8x256xf32> -> vector<8x256xf32>
    %251 = vector.extract_strided_slice %250 {offsets = [0, 128], sizes = [8, 128], strides = [1, 1]} : vector<8x256xf32> to vector<8x128xf32>
    %252 = vector.extract_strided_slice %250 {offsets = [0, 0], sizes = [8, 128], strides = [1, 1]} : vector<8x256xf32> to vector<8x128xf32>
    %253 = arith.addf %252, %3 : vector<8x128xf32>
    %254 = arith.negf %253 : vector<8x128xf32>
    %255 = math.exp %254 : vector<8x128xf32>
    %cst_52 = arith.constant 1.000000e+00 : f32
    %256 = vector.broadcast %cst_52 : f32 to vector<8x128xf32>
    %257 = arith.addf %256, %255 : vector<8x128xf32>
    %258 = arith.divf %256, %257 : vector<8x128xf32>
    %259 = vector.extract_strided_slice %258 {offsets = [0, 0], sizes = [8, 32], strides = [1, 1]} : vector<8x128xf32> to vector<8x32xf32>
    %260 = vector.extract_strided_slice %258 {offsets = [0, 32], sizes = [8, 32], strides = [1, 1]} : vector<8x128xf32> to vector<8x32xf32>
    %261 = vector.extract_strided_slice %258 {offsets = [0, 64], sizes = [8, 32], strides = [1, 1]} : vector<8x128xf32> to vector<8x32xf32>
    %cst_53 = arith.constant 2.000000e+00 : f32
    %262 = vector.broadcast %cst_53 : f32 to vector<8x32xf32>
    %263 = arith.mulf %262, %261 : vector<8x32xf32>
    %cst_54 = arith.constant 1.000000e+00 : f32
    %264 = vector.broadcast %cst_54 : f32 to vector<8x32xf32>
    %265 = arith.subf %263, %264 : vector<8x32xf32>
    %266 = vector.extract_strided_slice %258 {offsets = [0, 96], sizes = [8, 32], strides = [1, 1]} : vector<8x128xf32> to vector<8x32xf32>
    %267 = arith.mulf %260, %226 : vector<8x32xf32>
    %268 = arith.mulf %259, %265 : vector<8x32xf32>
    %269 = arith.addf %267, %268 : vector<8x32xf32>
    %270 = math.tanh %269 : vector<8x32xf32>
    %271 = arith.mulf %266, %270 : vector<8x32xf32>
    %272 = vector.extract_strided_slice %9 {offsets = [48, 0], sizes = [8, 128], strides = [1, 1]} : vector<64x128xf32> to vector<8x128xf32>
    %273 = arith.addf %272, %251 : vector<8x128xf32>
    %274 = arith.negf %273 : vector<8x128xf32>
    %275 = math.exp %274 : vector<8x128xf32>
    %cst_55 = arith.constant 1.000000e+00 : f32
    %276 = vector.broadcast %cst_55 : f32 to vector<8x128xf32>
    %277 = arith.addf %276, %275 : vector<8x128xf32>
    %278 = arith.divf %276, %277 : vector<8x128xf32>
    %279 = vector.extract_strided_slice %278 {offsets = [0, 0], sizes = [8, 32], strides = [1, 1]} : vector<8x128xf32> to vector<8x32xf32>
    %280 = vector.extract_strided_slice %278 {offsets = [0, 32], sizes = [8, 32], strides = [1, 1]} : vector<8x128xf32> to vector<8x32xf32>
    %281 = vector.extract_strided_slice %278 {offsets = [0, 64], sizes = [8, 32], strides = [1, 1]} : vector<8x128xf32> to vector<8x32xf32>
    %cst_56 = arith.constant 2.000000e+00 : f32
    %282 = vector.broadcast %cst_56 : f32 to vector<8x32xf32>
    %283 = arith.mulf %282, %281 : vector<8x32xf32>
    %cst_57 = arith.constant 1.000000e+00 : f32
    %284 = vector.broadcast %cst_57 : f32 to vector<8x32xf32>
    %285 = arith.subf %283, %284 : vector<8x32xf32>
    %286 = vector.extract_strided_slice %278 {offsets = [0, 96], sizes = [8, 32], strides = [1, 1]} : vector<8x128xf32> to vector<8x32xf32>
    %287 = arith.mulf %280, %246 : vector<8x32xf32>
    %288 = arith.mulf %279, %285 : vector<8x32xf32>
    %289 = arith.addf %287, %288 : vector<8x32xf32>
    %290 = math.tanh %289 : vector<8x32xf32>
    %291 = arith.mulf %286, %290 : vector<8x32xf32>
    %292 = tpu.concatenate %291, %271 in 1 : vector<8x32xf32>, vector<8x32xf32> -> vector<8x64xf32>
    %cst_58 = arith.constant dense<0.000000e+00> : vector<8x256xf32>
    %293 = tpu.matmul %292, %0, %cst_58 {dimension_numbers = #tpu.dot_dimension_numbers<[1], [0], [0], [1], [0, 0, 1, 1], [], []>} : vector<8x64xf32>, vector<64x256xf32>, vector<8x256xf32> -> vector<8x256xf32>
    %294 = vector.extract_strided_slice %293 {offsets = [0, 128], sizes = [8, 128], strides = [1, 1]} : vector<8x256xf32> to vector<8x128xf32>
    %295 = vector.extract_strided_slice %293 {offsets = [0, 0], sizes = [8, 128], strides = [1, 1]} : vector<8x256xf32> to vector<8x128xf32>
    %296 = arith.addf %295, %3 : vector<8x128xf32>
    %297 = arith.negf %296 : vector<8x128xf32>
    %298 = math.exp %297 : vector<8x128xf32>
    %cst_59 = arith.constant 1.000000e+00 : f32
    %299 = vector.broadcast %cst_59 : f32 to vector<8x128xf32>
    %300 = arith.addf %299, %298 : vector<8x128xf32>
    %301 = arith.divf %299, %300 : vector<8x128xf32>
    %302 = vector.extract_strided_slice %301 {offsets = [0, 0], sizes = [8, 32], strides = [1, 1]} : vector<8x128xf32> to vector<8x32xf32>
    %303 = vector.extract_strided_slice %301 {offsets = [0, 32], sizes = [8, 32], strides = [1, 1]} : vector<8x128xf32> to vector<8x32xf32>
    %304 = vector.extract_strided_slice %301 {offsets = [0, 64], sizes = [8, 32], strides = [1, 1]} : vector<8x128xf32> to vector<8x32xf32>
    %cst_60 = arith.constant 2.000000e+00 : f32
    %305 = vector.broadcast %cst_60 : f32 to vector<8x32xf32>
    %306 = arith.mulf %305, %304 : vector<8x32xf32>
    %cst_61 = arith.constant 1.000000e+00 : f32
    %307 = vector.broadcast %cst_61 : f32 to vector<8x32xf32>
    %308 = arith.subf %306, %307 : vector<8x32xf32>
    %309 = vector.extract_strided_slice %301 {offsets = [0, 96], sizes = [8, 32], strides = [1, 1]} : vector<8x128xf32> to vector<8x32xf32>
    %310 = arith.mulf %303, %269 : vector<8x32xf32>
    %311 = arith.mulf %302, %308 : vector<8x32xf32>
    %312 = arith.addf %310, %311 : vector<8x32xf32>
    %313 = math.tanh %312 : vector<8x32xf32>
    %314 = arith.mulf %309, %313 : vector<8x32xf32>
    %315 = vector.extract_strided_slice %9 {offsets = [56, 0], sizes = [8, 128], strides = [1, 1]} : vector<64x128xf32> to vector<8x128xf32>
    %316 = arith.addf %315, %294 : vector<8x128xf32>
    %317 = arith.negf %316 : vector<8x128xf32>
    %318 = math.exp %317 : vector<8x128xf32>
    %cst_62 = arith.constant 1.000000e+00 : f32
    %319 = vector.broadcast %cst_62 : f32 to vector<8x128xf32>
    %320 = arith.addf %319, %318 : vector<8x128xf32>
    %321 = arith.divf %319, %320 : vector<8x128xf32>
    %322 = vector.extract_strided_slice %321 {offsets = [0, 0], sizes = [8, 32], strides = [1, 1]} : vector<8x128xf32> to vector<8x32xf32>
    %323 = vector.extract_strided_slice %321 {offsets = [0, 32], sizes = [8, 32], strides = [1, 1]} : vector<8x128xf32> to vector<8x32xf32>
    %324 = vector.extract_strided_slice %321 {offsets = [0, 64], sizes = [8, 32], strides = [1, 1]} : vector<8x128xf32> to vector<8x32xf32>
    %cst_63 = arith.constant 2.000000e+00 : f32
    %325 = vector.broadcast %cst_63 : f32 to vector<8x32xf32>
    %326 = arith.mulf %325, %324 : vector<8x32xf32>
    %cst_64 = arith.constant 1.000000e+00 : f32
    %327 = vector.broadcast %cst_64 : f32 to vector<8x32xf32>
    %328 = arith.subf %326, %327 : vector<8x32xf32>
    %329 = vector.extract_strided_slice %321 {offsets = [0, 96], sizes = [8, 32], strides = [1, 1]} : vector<8x128xf32> to vector<8x32xf32>
    %330 = arith.mulf %323, %289 : vector<8x32xf32>
    %331 = arith.mulf %322, %328 : vector<8x32xf32>
    %332 = arith.addf %330, %331 : vector<8x32xf32>
    %333 = math.tanh %332 : vector<8x32xf32>
    %334 = arith.mulf %329, %333 : vector<8x32xf32>
    %335 = tpu.concatenate %334, %314 in 1 : vector<8x32xf32>, vector<8x32xf32> -> vector<8x64xf32>
    %cst_65 = arith.constant dense<0.000000e+00> : vector<8x256xf32>
    %336 = tpu.matmul %335, %0, %cst_65 {dimension_numbers = #tpu.dot_dimension_numbers<[1], [0], [0], [1], [0, 0, 1, 1], [], []>} : vector<8x64xf32>, vector<64x256xf32>, vector<8x256xf32> -> vector<8x256xf32>
    %337 = vector.extract_strided_slice %336 {offsets = [0, 0], sizes = [8, 128], strides = [1, 1]} : vector<8x256xf32> to vector<8x128xf32>
    %338 = arith.addf %337, %3 : vector<8x128xf32>
    %339 = arith.negf %338 : vector<8x128xf32>
    %340 = math.exp %339 : vector<8x128xf32>
    %cst_66 = arith.constant 1.000000e+00 : f32
    %341 = vector.broadcast %cst_66 : f32 to vector<8x128xf32>
    %342 = arith.addf %341, %340 : vector<8x128xf32>
    %343 = arith.divf %341, %342 : vector<8x128xf32>
    %344 = vector.extract_strided_slice %343 {offsets = [0, 0], sizes = [8, 32], strides = [1, 1]} : vector<8x128xf32> to vector<8x32xf32>
    %345 = vector.extract_strided_slice %343 {offsets = [0, 32], sizes = [8, 32], strides = [1, 1]} : vector<8x128xf32> to vector<8x32xf32>
    %346 = vector.extract_strided_slice %343 {offsets = [0, 64], sizes = [8, 32], strides = [1, 1]} : vector<8x128xf32> to vector<8x32xf32>
    %cst_67 = arith.constant 2.000000e+00 : f32
    %347 = vector.broadcast %cst_67 : f32 to vector<8x32xf32>
    %348 = arith.mulf %347, %346 : vector<8x32xf32>
    %cst_68 = arith.constant 1.000000e+00 : f32
    %349 = vector.broadcast %cst_68 : f32 to vector<8x32xf32>
    %350 = arith.subf %348, %349 : vector<8x32xf32>
    %351 = vector.extract_strided_slice %343 {offsets = [0, 96], sizes = [8, 32], strides = [1, 1]} : vector<8x128xf32> to vector<8x32xf32>
    %352 = arith.mulf %345, %312 : vector<8x32xf32>
    %353 = arith.mulf %344, %350 : vector<8x32xf32>
    %354 = arith.addf %352, %353 : vector<8x32xf32>
    %355 = math.tanh %354 : vector<8x32xf32>
    %356 = arith.mulf %351, %355 : vector<8x32xf32>
    %c0_69 = arith.constant 0 : index
    %c0_70 = arith.constant 0 : index
    %357 = vector.load %arg5[%c0_69, %c0_70] : memref<32x128xf32, #tpu.memory_space<vmem>>, vector<32x128xf32>
    %cst_71 = arith.constant dense<0.000000e+00> : vector<8x128xf32>
    %358 = tpu.matmul %356, %357, %cst_71 {dimension_numbers = #tpu.dot_dimension_numbers<[1], [0], [0], [1], [0, 0, 1, 1], [], []>} : vector<8x32xf32>, vector<32x128xf32>, vector<8x128xf32> -> vector<8x128xf32>
    %c0_72 = arith.constant 0 : index
    %c0_73 = arith.constant 0 : index
    %359 = vector.load %arg6[%c0_72, %c0_73] : memref<1x128xf32, #tpu.memory_space<vmem>>, vector<1x128xf32>
    %360 = vector.broadcast %359 : vector<1x128xf32> to vector<8x128xf32>
    %361 = arith.addf %358, %360 : vector<8x128xf32>
    %c0_74 = arith.constant 0 : index
    %c0_75 = arith.constant 0 : index
    %362 = vector.load %arg7[%c0_74, %c0_75] : memref<8x128xf32, #tpu.memory_space<vmem>>, vector<8x128xf32>
    tpu.vector_store %arg7[%c0_74, %c0_75], %361 {strides = array<i32>} : memref<8x128xf32, #tpu.memory_space<vmem>>, vector<8x128xf32>,
    return
  }
}

</mosaic_0001>

<bundles_post_ra>
// kernel: tpu_custom_call.1
= control target key start
LH: loop header
LB: loop body
LE: loop exit
PB: predicated region body
PF: predicated region fallthrough
CT: control target
= control target key end

     0   :  { %12 = vsyncpa [#allocation3], 0  ;;  %s2121_s0 = inlined_call_operand.vmem [shape: f32[64,4], index: 0, kind: input, shape index: {}]   ;;  %s2122_s1 = inlined_call_operand.vmem [shape: f32[4,128], index: 1, kind: input, shape index: {}]   ;;  %s2123_s2 = inlined_call_operand.vmem [shape: f32[1,128], index: 2, kind: input, shape index: {}]   ;;  %s2124_s3 = inlined_call_operand.hbm [shape: f32[64,256], index: 3, kind: input, shape index: {}]   ;;  %s2125_s4 = inlined_call_operand.vmem [shape: f32[1,128], index: 4, kind: input, shape index: {}]   ;;  %s2126_s5 = inlined_call_operand.vmem [shape: f32[32,128], index: 5, kind: input, shape index: {}]   ;;  %s2127_s6 = inlined_call_operand.vmem [shape: f32[1,128], index: 6, kind: input, shape index: {}]   ;;  %s2128_s7 = inlined_call_operand.hbm [shape: f32[8,128], index: 7, kind: output, shape index: {}]  }
   0x1   :  { %13 = vsyncpa [#allocation4], 0  ;;  %s1772_s24 = smov [#allocation2]   ;;  %s1724_s28 = scalar_lea.hbm %s2124_s3, 2048 }
   0x2   :  { %s25_s25 = sshll.u32 %s1772_s24, 4  ;;  %p1725_p0 = scmp.ne.s32.totalorder %s2124_s3, %s1724_s28  ;;  %s26_s25 = int_to_ptr.vmem [resolvable:$true] %s25_s25 }
   0x3   :  { %p1728_p1 = scmp.lt.u32.totalorder %s1724_s28, %s2124_s3 }
   0x5   :  { %p1730_p2 = pnand %p1728_p1, %p1725_p0 }
   0x7   :  { %1733 = shalt.err (!%p1730_p2)
}
   0x8   :  { %s1734_s10 = scalar_lea.vmem %s26_s25, 2048  ;;  %p1739_p4 = scmp.lt.s32.totalorder %s26_s25, %s26_s25 }
   0x9   :  { %p1735_p3 = scmp.ne.s32.totalorder %s26_s25, %s1734_s10  ;;  %p1740_p5 = scmp.lt.s32.totalorder %s1734_s10, %s1734_s10 }
   0xb   :  { %p1741_p6 = por %p1740_p5, %p1739_p4 }
   0xd   :  { %p1742_p7 = pnand %p1741_p6, %p1735_p3 }
   0xf   :  { %1745 = shalt.err (!%p1742_p7)
}
  0x10   :  { %s1773_s11 = smov 256   ;;  %s1774_s12 = smov 16  }
  0x11   :  { %31 = dma.hbm_to_vmem [thread:$0]  %s2124_s3, 2048, %s26_s25, [#allocation3], %s1773_s11, %s1773_s11, %s1774_s12  }
  0x12   :  { %1768 = dma.done.wait [#allocation3], 2048  }
  0x13   :  { %1769 = vsyncadd [#allocation3], 4294965248  ;;  %vm105_vm0 = vcmask 1043456   ;;  %vm80_vm1 = vcmask 31744   ;;  %v72_v0 = vld [vmem:[%s2122_s1] sm:$0xf] }
  0x14   :  { %v64_v1 = vld [vmem:[%s2121_s0] sm:$0xff]  ;;  %v65_v2 = vld [vmem:[%s2121_s0 + $0x8] sm:$0xff]  ;;  %1460 = vmatprep.subr.msk.mxu0 %vm105_vm0, %v72_v0  ;;  %s1775_s1 = smov 64   ;;  %v44_v19 = vld [vmem:[#allocation2 + $0x18] sm:$0xff]  ;;  %v1777_v43 = vmov 0.0   ;;  %vm244_vm2 = vcmask 261120  }
  0x15   :  { %1462 = vmatprep.mubr.msk.f32.mxu0 %vm80_vm1, %v64_v1  ;;  %1461 = vmatpush3.msk.msra.mxu0 %vm105_vm0, %v72_v0  ;;  %v1847_v3 = vld [vmem:[%s2123_s2] ss:$0 sm:$0xff]  ;;  %s1776_s2 = smov 32   ;;  %v42_v18 = vld [vmem:[#allocation2 + $0x8] sm:$0xff]  ;;  %v43_v22 = vld [vmem:[#allocation2 + $0x10] sm:$0xff]  ;;  %vm246_vm3 = vcmask 523264  }
  0x16   :  { %1463 = vmatmul.mubr.msk.f32.vlgmr.msra.gmra.mrb[0].mxu0 %vm80_vm1, %v65_v2  ;;  %v41_v20 = vld [vmem:[#allocation2] sm:$0xff]  ;;  %v1857_v21 = vpack.c.bf16 %v44_v19, %v42_v18  ;;  %v46_v23 = vld [vmem:[#allocation2 + $0x28] sm:$0xff]  ;;  %v48_v24 = vld [vmem:[#allocation2 + $0x38] sm:$0xff]  ;;  %314 = vmatprep.mubr.f32.mxu1 %v1777_v43  ;;  %vm1779_vm4 = vmmov 0  }
  0x17   :  { %v1859_v25 = vpack.c.bf16 %v43_v22, %v41_v20  ;;  %v1861_v26 = vpack.c.bf16 %v48_v24, %v46_v23  ;;  %v45_v27 = vld [vmem:[#allocation2 + $0x20] sm:$0xff]  ;;  %v47_v28 = vld [vmem:[#allocation2 + $0x30] sm:$0xff]  ;;  %v50_v29 = vld [vmem:[#allocation2 + $0x48] sm:$0xff] }
  0x18   :  { %1486 = vmatprep.subr.bf16.mxu1 %v1857_v21  ;;  %v52_v30 = vld [vmem:[#allocation2 + $0x58] sm:$0xff]  ;;  %1502 = vmatprep.subr.bf16.mxu0 %v1857_v21  ;;  %v1866_v31 = vpack.c.bf16 %v47_v28, %v45_v27  ;;  %v49_v33 = vld [vmem:[#allocation2 + $0x40] sm:$0xff]  ;;  %v51_v34 = vld [vmem:[#allocation2 + $0x50] sm:$0xff] }
  0x19   :  { %1488 = vmatpush1.bf16.msra.mxu1 %v1859_v25  ;;  %1504 = vmatpush1.bf16.msra.mxu0 %v1859_v25  ;;  %v1870_v32 = vpack.c.bf16 %v52_v30, %v50_v29  ;;  %v54_v35 = vld [vmem:[#allocation2 + $0x68] sm:$0xff]  ;;  %v56_v36 = vld [vmem:[#allocation2 + $0x78] sm:$0xff]  ;;  %v1874_v37 = vpack.c.bf16 %v51_v34, %v49_v33  ;;  %v53_v39 = vld [vmem:[#allocation2 + $0x60] sm:$0xff] }
  0x1a   :  { %1490 = vmatprep.subr.bf16.mxu1 %v1861_v26  ;;  %1506 = vmatprep.subr.bf16.mxu0 %v1861_v26  ;;  %v1878_v38 = vpack.c.bf16 %v56_v36, %v54_v35  ;;  %v55_v40 = vld [vmem:[#allocation2 + $0x70] sm:$0xff]  ;;  %v1908_v48 = vld [vmem:[%s2125_s4] ss:$0 sm:$0xff]  ;;  %v71_v18 = vld [vmem:[%s2121_s0 + $0x38] sm:$0xff] }
  0x1b   :  { %v1883_v42 = vpack.c.bf16 %v55_v40, %v53_v39 }
  0x1d   :  { %1492 = vmatpush1.bf16.msra.mxu1 %v1866_v31  ;;  %1508 = vmatpush1.bf16.msra.mxu0 %v1866_v31 }
  0x1e   :  { %1494 = vmatprep.subr.bf16.mxu1 %v1870_v32  ;;  %1510 = vmatprep.subr.bf16.mxu0 %v1870_v32 }
  0x21   :  { %1496 = vmatpush1.bf16.msra.mxu1 %v1874_v37  ;;  %1512 = vmatpush1.bf16.msra.mxu0 %v1874_v37 }
  0x22   :  { %1498 = vmatprep.subr.bf16.mxu1 %v1878_v38  ;;  %1514 = vmatprep.subr.bf16.mxu0 %v1878_v38 }
  0x25   :  { %1500 = vmatpush1.bf16.msra.mxu1 %v1883_v42  ;;  %1516 = vmatpush1.bf16.msra.mxu0 %v1883_v42 }
  0x26   :  { %1518 = vmatprep.subr.bf16.mxu1 %v1857_v21  ;;  %1534 = vmatprep.subr.bf16.mxu0 %v1857_v21 }
  0xe9   :  { %v1849_v4 = vpop.f32.mrb[0].mxu0 }
  0xea   :  { %v175_v5 = vpop.f32.mrb[1].mxu0  ;;  %v181_v49 = vadd.f32 %v1849_v4, %v1847_v3 }
  0xeb   :  { %v176_v6 = vadd.f32 %v1847_v3, %v175_v5 }
  0xed   :  { %v1404_v7 = vmul.f32 -1.442695, %v176_v6 }
  0xef   :  { %1628 = vpow2.f32 %v1404_v7 }
  0xf9   :  { %v1629_v8 = vpop.eup %1628 }
  0xfa   :  { %v218_v9 = vadd.f32 1.0, %v1629_v8 }
  0xfc   :  { %1630 = vrcp.f32 %v218_v9 }
 0x106   :  { %v1631_v10 = vpop.eup %1630 }
 0x107   :  { %v221_v11 = vmul.f32 2.0, %v1631_v10  ;;  %v223_v15 = vmul.f32 0.0, %v1631_v10 }
 0x109   :  { %v1405_v12 = vadd.f32 -1.0, %v221_v11 }
 0x10b   :  { %225 = vrot.lane.b32.xlu0 %v1405_v12, %s1775_s1 }
 0x17d   :  { %v226_v13 = vpop.permute.xlu0 %225 }
 0x17e   :  { %v228_v14 = vmul.f32 %v1631_v10, %v226_v13  ;;  %v66_v13 = vld [vmem:[%s2121_s0 + $0x10] sm:$0xff] }
 0x17f   :  { %1465 = vmatprep.mubr.msk.f32.mxu0 %vm80_vm1, %v66_v13 }
 0x180   :  { %230 = vrot.lane.b32.xlu0 %v228_v14, %s1776_s2  ;;  %v67_v14 = vld [vmem:[%s2121_s0 + $0x18] sm:$0xff] }
 0x181   :  { %1466 = vmatmul.mubr.msk.f32.gmra.mrb[2].mxu0 %vm80_vm1, %v67_v14 }
 0x1f2   :  { %v231_v16 = vpop.permute.xlu0 %230 }
 0x1f3   :  { %v1854_v17 = vadd.f32 %v231_v16, %v223_v15  ;;  %v68_v15 = vld [vmem:[%s2121_s0 + $0x20] sm:$0xff]  ;;  %v69_v16 = vld [vmem:[%s2121_s0 + $0x28] sm:$0xff] }
 0x1f4   :  { %1468 = vmatprep.mubr.msk.f32.mxu0 %vm80_vm1, %v68_v15 }
 0x1f5   :  { %1632 = vtanh.f32 %v1854_v17  ;;  %1469 = vmatmul.mubr.msk.f32.gmra.mrb[4].mxu0 %vm80_vm1, %v69_v16 }
 0x1ff   :  { %v1633_v41 = vpop.eup %1632 }
 0x200   :  { %236 = vrot.lane.b32.xlu1 %v1633_v41, %s1775_s1 }
 0x254   :  { %v1953_v28 = vpop.f32.mrb[2].mxu0 }
 0x255   :  { %v185_v29 = vpop.f32.mrb[3].mxu0 }
 0x256   :  { %v186_v41 = vadd.f32 %v1847_v3, %v185_v29 }
 0x272   :  { %v237_v44 = vpop.permute.xlu1 %236 }
 0x273   :  { %v239_v45 = vmul.f32 %v1631_v10, %v237_v44 }
 0x275   :  { %241 = vrot.lane.b32.xlu1 %v239_v45, %s1776_s2 }
 0x2c8   :  { %v1955_v30 = vpop.f32.mrb[4].mxu0 }
 0x2c9   :  { %v1957_v33 = vpop.f32.mrb[5].mxu0 }
 0x2e7   :  { %v242_v46 = vpop.permute.xlu1 %241 }
 0x2e8   :  { %v245_v47 = vsel %vm244_vm2, %v242_v46, 0.0 }
 0x2e9   :  { %1406 = vmatmul.mubr.msk.f32.vlgmr.msra.gmra.mrb[0].mxu1 %vm246_vm3, %v245_v47 }
 0x2ea   :  { %1520 = vmatpush1.bf16.msra.mxu1 %v1859_v25  ;;  %584 = vmatprep.mubr.f32.mxu1 %v1777_v43 }
 0x2eb   :  { %1522 = vmatprep.subr.bf16.mxu1 %v1861_v26 }
 0x2ee   :  { %1524 = vmatpush1.bf16.msra.mxu1 %v1866_v31 }
 0x2ef   :  { %1526 = vmatprep.subr.bf16.mxu1 %v1870_v32 }
 0x2f2   :  { %1528 = vmatpush1.bf16.msra.mxu1 %v1874_v37 }
 0x2f3   :  { %1530 = vmatprep.subr.bf16.mxu1 %v1878_v38 }
 0x2f6   :  { %1532 = vmatpush1.bf16.msra.mxu1 %v1883_v42 }
 0x2f7   :  { %1550 = vmatprep.subr.bf16.mxu1 %v1857_v21 }
 0x3bc   :  { %v316_v50 = vpop.f32.mrb[0].mxu1 }
 0x3bd   :  { %v321_v51 = vadd.f32 %v1908_v48, %v316_v50  ;;  %v318_v52 = vpop.f32.mrb[1].mxu1 }
 0x3be   :  { %v347_v53 = vadd.f32 %v318_v52, %v181_v49 }
 0x3bf   :  { %v1407_v54 = vmul.f32 -1.442695, %v321_v51 }
 0x3c0   :  { %v1409_v55 = vmul.f32 -1.442695, %v347_v53 }
 0x3c1   :  { %1634 = vpow2.f32 %v1407_v54 }
 0x3c2   :  { %1636 = vpow2.f32 %v1409_v55 }
 0x3cb   :  { %v1635_v56 = vpop.eup %1634 }
 0x3cc   :  { %v1637_v57 = vpop.eup %1636  ;;  %v325_v58 = vadd.f32 1.0, %v1635_v56 }
 0x3cd   :  { %v351_v59 = vadd.f32 1.0, %v1637_v57 }
 0x3ce   :  { %1638 = vrcp.f32 %v325_v58 }
 0x3cf   :  { %1640 = vrcp.f32 %v351_v59 }
 0x3d8   :  { %v1639_v60 = vpop.eup %1638 }
 0x3d9   :  { %v1641_v61 = vpop.eup %1640  ;;  %v328_v62 = vmul.f32 2.0, %v1639_v60  ;;  %v330_v7 = vmul.f32 0.0, %v1639_v60 }
 0x3da   :  { %v354_v63 = vmul.f32 2.0, %v1641_v61  ;;  %v356_v9 = vmul.f32 %v1641_v61, %v1854_v17  ;;  %v70_v17 = vld [vmem:[%s2121_s0 + $0x30] sm:$0xff] }
 0x3db   :  { %v1408_v0 = vadd.f32 -1.0, %v328_v62  ;;  %1471 = vmatprep.mubr.msk.f32.mxu0 %vm80_vm1, %v70_v17  ;;  %v191_v17 = vadd.f32 %v1953_v28, %v1847_v3 }
 0x3dc   :  { %v1410_v1 = vadd.f32 -1.0, %v354_v63  ;;  %1472 = vmatmul.mubr.msk.f32.gmra.mrb[6].mxu0 %vm80_vm1, %v71_v18 }
 0x3dd   :  { %332 = vrot.lane.b32.xlu0 %v1408_v0, %s1775_s1  ;;  %449 = vmatprep.mubr.f32.mxu0 %v1777_v43 }
 0x3de   :  { %358 = vrot.lane.b32.xlu1 %v1410_v1, %s1775_s1 }
 0x44f   :  { %v333_v2 = vpop.permute.xlu0 %332 }
 0x450   :  { %v335_v4 = vmul.f32 %v1639_v60, %v333_v2  ;;  %v359_v5 = vpop.permute.xlu1 %358 }
 0x451   :  { %v361_v6 = vmul.f32 %v1641_v61, %v359_v5 }
 0x452   :  { %337 = vrot.lane.b32.xlu0 %v335_v4, %s1776_s2 }
 0x453   :  { %363 = vrot.lane.b32.xlu1 %v361_v6, %s1776_s2 }
 0x4af   :  { %v1959_v34 = vpop.f32.mrb[6].mxu0 }
 0x4b0   :  { %v1961_v35 = vpop.f32.mrb[7].mxu0 }
 0x4c4   :  { %v338_v8 = vpop.permute.xlu0 %337 }
 0x4c5   :  { %v1918_v10 = vadd.f32 %v338_v8, %v330_v7  ;;  %v364_v11 = vpop.permute.xlu1 %363 }
 0x4c6   :  { %v1920_v12 = vadd.f32 %v364_v11, %v356_v9 }
 0x4c7   :  { %1642 = vtanh.f32 %v1918_v10 }
 0x4c8   :  { %1644 = vtanh.f32 %v1920_v12 }
 0x4d1   :  { %v1643_v19 = vpop.eup %1642 }
 0x4d2   :  { %v1645_v20 = vpop.eup %1644  ;;  %343 = vrot.lane.b32.xlu0 %v1643_v19, %s1775_s1 }
 0x4d3   :  { %369 = vrot.lane.b32.xlu1 %v1645_v20, %s1775_s1 }
 0x544   :  { %v344_v22 = vpop.permute.xlu0 %343 }
 0x545   :  { %v346_v23 = vmul.f32 %v1639_v60, %v344_v22  ;;  %v370_v24 = vpop.permute.xlu1 %369 }
 0x546   :  { %v372_v27 = vmul.f32 %v1641_v61, %v370_v24 }
 0x547   :  { %378 = vrot.lane.b32.xlu1 %v346_v23, %s1775_s1 }
 0x548   :  { %374 = vrot.lane.b32.xlu0 %v372_v27, %s1776_s2 }
 0x5b9   :  { %v379_v36 = vpop.permute.xlu1 %378 }
 0x5ba   :  { %v375_v39 = vpop.permute.xlu0 %374 }
 0x5bb   :  { %v381_v40 = vsel %vm244_vm2, %v375_v39, %v379_v36 }
 0x5bc   :  { %1411 = vmatmul.mubr.msk.f32.vlgmr.msra.gmra.mrb[8].mxu0 %vm246_vm3, %v381_v40 }
 0x5bd   :  { %1536 = vmatpush1.bf16.msra.mxu0 %v1859_v25  ;;  %719 = vmatprep.mubr.f32.mxu0 %v1777_v43 }
 0x5be   :  { %1538 = vmatprep.subr.bf16.mxu0 %v1861_v26 }
 0x5c1   :  { %1540 = vmatpush1.bf16.msra.mxu0 %v1866_v31 }
 0x5c2   :  { %1542 = vmatprep.subr.bf16.mxu0 %v1870_v32 }
 0x5c5   :  { %1544 = vmatpush1.bf16.msra.mxu0 %v1874_v37 }
 0x5c6   :  { %1546 = vmatprep.subr.bf16.mxu0 %v1878_v38 }
 0x5c9   :  { %1548 = vmatpush1.bf16.msra.mxu0 %v1883_v42 }
 0x5ca   :  { %1566 = vmatprep.subr.bf16.mxu0 %v1857_v21 }
 0x68f   :  { %v451_v44 = vpop.f32.mrb[8].mxu0 }
 0x690   :  { %v456_v45 = vadd.f32 %v1908_v48, %v451_v44  ;;  %v453_v46 = vpop.f32.mrb[9].mxu0 }
 0x691   :  { %v482_v47 = vadd.f32 %v453_v46, %v186_v41 }
 0x692   :  { %v1412_v49 = vmul.f32 -1.442695, %v456_v45 }
 0x693   :  { %v1414_v50 = vmul.f32 -1.442695, %v482_v47 }
 0x694   :  { %1646 = vpow2.f32 %v1412_v49 }
 0x695   :  { %1648 = vpow2.f32 %v1414_v50 }
 0x69e   :  { %v1647_v51 = vpop.eup %1646 }
 0x69f   :  { %v1649_v52 = vpop.eup %1648  ;;  %v460_v53 = vadd.f32 1.0, %v1647_v51 }
 0x6a0   :  { %v486_v54 = vadd.f32 1.0, %v1649_v52 }
 0x6a1   :  { %1650 = vrcp.f32 %v460_v53 }
 0x6a2   :  { %1652 = vrcp.f32 %v486_v54 }
 0x6ab   :  { %v1651_v55 = vpop.eup %1650 }
 0x6ac   :  { %v1653_v56 = vpop.eup %1652  ;;  %v463_v57 = vmul.f32 2.0, %v1651_v55  ;;  %v465_v1 = vmul.f32 %v1651_v55, %v1918_v10 }
 0x6ad   :  { %v489_v58 = vmul.f32 2.0, %v1653_v56  ;;  %v491_v4 = vmul.f32 %v1653_v56, %v1920_v12 }
 0x6ae   :  { %v1413_v59 = vadd.f32 -1.0, %v463_v57 }
 0x6af   :  { %v1415_v60 = vadd.f32 -1.0, %v489_v58 }
 0x6b0   :  { %467 = vrot.lane.b32.xlu0 %v1413_v59, %s1775_s1 }
 0x6b1   :  { %493 = vrot.lane.b32.xlu1 %v1415_v60, %s1775_s1 }
 0x722   :  { %v468_v61 = vpop.permute.xlu0 %467 }
 0x723   :  { %v470_v62 = vmul.f32 %v1651_v55, %v468_v61  ;;  %v494_v63 = vpop.permute.xlu1 %493 }
 0x724   :  { %v496_v0 = vmul.f32 %v1653_v56, %v494_v63 }
 0x725   :  { %472 = vrot.lane.b32.xlu0 %v470_v62, %s1776_s2 }
 0x726   :  { %498 = vrot.lane.b32.xlu1 %v496_v0, %s1776_s2 }
 0x797   :  { %v473_v2 = vpop.permute.xlu0 %472 }
 0x798   :  { %v475_v5 = vadd.f32 %v473_v2, %v465_v1  ;;  %v499_v6 = vpop.permute.xlu1 %498 }
 0x799   :  { %v501_v7 = vadd.f32 %v499_v6, %v491_v4  ;;  %v196_v4 = vadd.f32 %v1847_v3, %v1957_v33 }
 0x79a   :  { %1654 = vtanh.f32 %v475_v5 }
 0x79b   :  { %1656 = vtanh.f32 %v501_v7 }
 0x7a4   :  { %v1655_v8 = vpop.eup %1654 }
 0x7a5   :  { %v1657_v9 = vpop.eup %1656  ;;  %478 = vrot.lane.b32.xlu0 %v1655_v8, %s1775_s1 }
 0x7a6   :  { %504 = vrot.lane.b32.xlu1 %v1657_v9, %s1775_s1 }
 0x817   :  { %v479_v11 = vpop.permute.xlu0 %478 }
 0x818   :  { %v481_v13 = vmul.f32 %v1651_v55, %v479_v11  ;;  %v505_v14 = vpop.permute.xlu1 %504 }
 0x819   :  { %v507_v15 = vmul.f32 %v1653_v56, %v505_v14 }
 0x81a   :  { %513 = vrot.lane.b32.xlu1 %v481_v13, %s1775_s1 }
 0x81b   :  { %509 = vrot.lane.b32.xlu0 %v507_v15, %s1776_s2 }
 0x88c   :  { %v514_v10 = vpop.permute.xlu1 %513 }
 0x88d   :  { %v510_v12 = vpop.permute.xlu0 %509 }
 0x88e   :  { %v516_v16 = vsel %vm244_vm2, %v510_v12, %v514_v10 }
 0x88f   :  { %1416 = vmatmul.mubr.msk.f32.vlgmr.msra.gmra.mrb[2].mxu1 %vm246_vm3, %v516_v16 }
 0x890   :  { %1552 = vmatpush1.bf16.msra.mxu1 %v1859_v25  ;;  %854 = vmatprep.mubr.f32.mxu1 %v1777_v43 }
 0x891   :  { %1554 = vmatprep.subr.bf16.mxu1 %v1861_v26 }
 0x894   :  { %1556 = vmatpush1.bf16.msra.mxu1 %v1866_v31 }
 0x895   :  { %1558 = vmatprep.subr.bf16.mxu1 %v1870_v32 }
 0x898   :  { %1560 = vmatpush1.bf16.msra.mxu1 %v1874_v37 }
 0x899   :  { %1562 = vmatprep.subr.bf16.mxu1 %v1878_v38 }
 0x89c   :  { %1564 = vmatpush1.bf16.msra.mxu1 %v1883_v42 }
 0x89d   :  { %1582 = vmatprep.subr.bf16.mxu1 %v1857_v21 }
 0x962   :  { %v586_v18 = vpop.f32.mrb[2].mxu1 }
 0x963   :  { %v591_v19 = vadd.f32 %v1908_v48, %v586_v18  ;;  %v588_v20 = vpop.f32.mrb[3].mxu1 }
 0x964   :  { %v617_v22 = vadd.f32 %v588_v20, %v191_v17 }
 0x965   :  { %v1417_v23 = vmul.f32 -1.442695, %v591_v19 }
 0x966   :  { %v1419_v24 = vmul.f32 -1.442695, %v617_v22 }
 0x967   :  { %1658 = vpow2.f32 %v1417_v23 }
 0x968   :  { %1660 = vpow2.f32 %v1419_v24 }
 0x971   :  { %v1659_v27 = vpop.eup %1658 }
 0x972   :  { %v1661_v29 = vpop.eup %1660  ;;  %v595_v36 = vadd.f32 1.0, %v1659_v27 }
 0x973   :  { %v621_v39 = vadd.f32 1.0, %v1661_v29 }
 0x974   :  { %1662 = vrcp.f32 %v595_v36 }
 0x975   :  { %1664 = vrcp.f32 %v621_v39 }
 0x97e   :  { %v1663_v40 = vpop.eup %1662 }
 0x97f   :  { %v1665_v41 = vpop.eup %1664  ;;  %v598_v44 = vmul.f32 2.0, %v1663_v40  ;;  %v600_v52 = vmul.f32 %v1663_v40, %v475_v5 }
 0x980   :  { %v624_v45 = vmul.f32 2.0, %v1665_v41  ;;  %v626_v54 = vmul.f32 %v1665_v41, %v501_v7 }
 0x981   :  { %v1418_v28 = vadd.f32 -1.0, %v598_v44 }
 0x982   :  { %v1420_v46 = vadd.f32 -1.0, %v624_v45 }
 0x983   :  { %602 = vrot.lane.b32.xlu0 %v1418_v28, %s1775_s1 }
 0x984   :  { %628 = vrot.lane.b32.xlu1 %v1420_v46, %s1775_s1 }
 0x9f5   :  { %v603_v47 = vpop.permute.xlu0 %602 }
 0x9f6   :  { %v605_v49 = vmul.f32 %v1663_v40, %v603_v47  ;;  %v629_v50 = vpop.permute.xlu1 %628 }
 0x9f7   :  { %v631_v51 = vmul.f32 %v1665_v41, %v629_v50 }
 0x9f8   :  { %607 = vrot.lane.b32.xlu0 %v605_v49, %s1776_s2 }
 0x9f9   :  { %633 = vrot.lane.b32.xlu1 %v631_v51, %s1776_s2 }
 0xa6a   :  { %v608_v53 = vpop.permute.xlu0 %607 }
 0xa6b   :  { %v610_v55 = vadd.f32 %v608_v53, %v600_v52  ;;  %v634_v56 = vpop.permute.xlu1 %633  ;;  %v201_v52 = vadd.f32 %v1955_v30, %v1847_v3 }
 0xa6c   :  { %v636_v57 = vadd.f32 %v634_v56, %v626_v54 }
 0xa6d   :  { %1666 = vtanh.f32 %v610_v55 }
 0xa6e   :  { %1668 = vtanh.f32 %v636_v57 }
 0xa77   :  { %v1667_v58 = vpop.eup %1666 }
 0xa78   :  { %v1669_v59 = vpop.eup %1668  ;;  %613 = vrot.lane.b32.xlu0 %v1667_v58, %s1775_s1 }
 0xa79   :  { %639 = vrot.lane.b32.xlu1 %v1669_v59, %s1775_s1 }
 0xaea   :  { %v614_v60 = vpop.permute.xlu0 %613 }
 0xaeb   :  { %v616_v61 = vmul.f32 %v1663_v40, %v614_v60  ;;  %v640_v62 = vpop.permute.xlu1 %639 }
 0xaec   :  { %v642_v63 = vmul.f32 %v1665_v41, %v640_v62 }
 0xaed   :  { %648 = vrot.lane.b32.xlu1 %v616_v61, %s1775_s1 }
 0xaee   :  { %644 = vrot.lane.b32.xlu0 %v642_v63, %s1776_s2 }
 0xb5f   :  { %v649_v0 = vpop.permute.xlu1 %648 }
 0xb60   :  { %v645_v1 = vpop.permute.xlu0 %644 }
 0xb61   :  { %v651_v2 = vsel %vm244_vm2, %v645_v1, %v649_v0 }
 0xb62   :  { %1421 = vmatmul.mubr.msk.f32.vlgmr.msra.gmra.mrb[10].mxu0 %vm246_vm3, %v651_v2 }
 0xb63   :  { %1568 = vmatpush1.bf16.msra.mxu0 %v1859_v25  ;;  %989 = vmatprep.mubr.f32.mxu0 %v1777_v43 }
 0xb64   :  { %1570 = vmatprep.subr.bf16.mxu0 %v1861_v26 }
 0xb67   :  { %1572 = vmatpush1.bf16.msra.mxu0 %v1866_v31 }
 0xb68   :  { %1574 = vmatprep.subr.bf16.mxu0 %v1870_v32 }
 0xb6b   :  { %1576 = vmatpush1.bf16.msra.mxu0 %v1874_v37 }
 0xb6c   :  { %1578 = vmatprep.subr.bf16.mxu0 %v1878_v38 }
 0xb6f   :  { %1580 = vmatpush1.bf16.msra.mxu0 %v1883_v42 }
 0xb70   :  { %1598 = vmatprep.subr.bf16.mxu0 %v1857_v21 }
 0xc35   :  { %v721_v5 = vpop.f32.mrb[10].mxu0 }
 0xc36   :  { %v726_v6 = vadd.f32 %v1908_v48, %v721_v5  ;;  %v723_v7 = vpop.f32.mrb[11].mxu0 }
 0xc37   :  { %v752_v8 = vadd.f32 %v723_v7, %v196_v4 }
 0xc38   :  { %v1422_v9 = vmul.f32 -1.442695, %v726_v6 }
 0xc39   :  { %v1424_v11 = vmul.f32 -1.442695, %v752_v8 }
 0xc3a   :  { %1670 = vpow2.f32 %v1422_v9 }
 0xc3b   :  { %1672 = vpow2.f32 %v1424_v11 }
 0xc44   :  { %v1671_v13 = vpop.eup %1670 }
 0xc45   :  { %v1673_v14 = vpop.eup %1672  ;;  %v730_v15 = vadd.f32 1.0, %v1671_v13 }
 0xc46   :  { %v756_v10 = vadd.f32 1.0, %v1673_v14 }
 0xc47   :  { %1674 = vrcp.f32 %v730_v15 }
 0xc48   :  { %1676 = vrcp.f32 %v756_v10 }
 0xc51   :  { %v1675_v12 = vpop.eup %1674 }
 0xc52   :  { %v1677_v21 = vpop.eup %1676  ;;  %v733_v16 = vmul.f32 2.0, %v1675_v12  ;;  %v735_v24 = vmul.f32 %v1675_v12, %v610_v55 }
 0xc53   :  { %v759_v17 = vmul.f32 2.0, %v1677_v21  ;;  %v761_v29 = vmul.f32 %v1677_v21, %v636_v57 }
 0xc54   :  { %v1423_v33 = vadd.f32 -1.0, %v733_v16 }
 0xc55   :  { %v1425_v18 = vadd.f32 -1.0, %v759_v17 }
 0xc56   :  { %737 = vrot.lane.b32.xlu0 %v1423_v33, %s1775_s1 }
 0xc57   :  { %763 = vrot.lane.b32.xlu1 %v1425_v18, %s1775_s1 }
 0xcc8   :  { %v738_v19 = vpop.permute.xlu0 %737 }
 0xcc9   :  { %v740_v20 = vmul.f32 %v1675_v12, %v738_v19  ;;  %v764_v22 = vpop.permute.xlu1 %763 }
 0xcca   :  { %v766_v23 = vmul.f32 %v1677_v21, %v764_v22 }
 0xccb   :  { %742 = vrot.lane.b32.xlu0 %v740_v20, %s1776_s2 }
 0xccc   :  { %768 = vrot.lane.b32.xlu1 %v766_v23, %s1776_s2  ;;  %v206_v23 = vadd.f32 %v1847_v3, %v1961_v35 }
 0xd3d   :  { %v743_v27 = vpop.permute.xlu0 %742 }
 0xd3e   :  { %v745_v36 = vadd.f32 %v743_v27, %v735_v24  ;;  %v769_v39 = vpop.permute.xlu1 %768 }
 0xd3f   :  { %v771_v40 = vadd.f32 %v769_v39, %v761_v29 }
 0xd40   :  { %1678 = vtanh.f32 %v745_v36 }
 0xd41   :  { %1680 = vtanh.f32 %v771_v40 }
 0xd4a   :  { %v1679_v41 = vpop.eup %1678 }
 0xd4b   :  { %v1681_v44 = vpop.eup %1680  ;;  %748 = vrot.lane.b32.xlu0 %v1679_v41, %s1775_s1 }
 0xd4c   :  { %774 = vrot.lane.b32.xlu1 %v1681_v44, %s1775_s1 }
 0xdbd   :  { %v749_v45 = vpop.permute.xlu0 %748 }
 0xdbe   :  { %v751_v28 = vmul.f32 %v1675_v12, %v749_v45  ;;  %v775_v46 = vpop.permute.xlu1 %774 }
 0xdbf   :  { %v777_v47 = vmul.f32 %v1677_v21, %v775_v46 }
 0xdc0   :  { %783 = vrot.lane.b32.xlu1 %v751_v28, %s1775_s1 }
 0xdc1   :  { %779 = vrot.lane.b32.xlu0 %v777_v47, %s1776_s2 }
 0xe32   :  { %v784_v49 = vpop.permute.xlu1 %783 }
 0xe33   :  { %v780_v50 = vpop.permute.xlu0 %779 }
 0xe34   :  { %v786_v51 = vsel %vm244_vm2, %v780_v50, %v784_v49 }
 0xe35   :  { %1426 = vmatmul.mubr.msk.f32.vlgmr.msra.gmra.mrb[4].mxu1 %vm246_vm3, %v786_v51 }
 0xe36   :  { %1584 = vmatpush1.bf16.msra.mxu1 %v1859_v25  ;;  %1124 = vmatprep.mubr.f32.mxu1 %v1777_v43 }
 0xe37   :  { %1586 = vmatprep.subr.bf16.mxu1 %v1861_v26 }
 0xe3a   :  { %1588 = vmatpush1.bf16.msra.mxu1 %v1866_v31 }
 0xe3b   :  { %1590 = vmatprep.subr.bf16.mxu1 %v1870_v32 }
 0xe3e   :  { %1592 = vmatpush1.bf16.msra.mxu1 %v1874_v37 }
 0xe3f   :  { %1594 = vmatprep.subr.bf16.mxu1 %v1878_v38 }
 0xe42   :  { %1596 = vmatpush1.bf16.msra.mxu1 %v1883_v42 }
 0xf08   :  { %v856_v53 = vpop.f32.mrb[4].mxu1 }
 0xf09   :  { %v861_v54 = vadd.f32 %v1908_v48, %v856_v53  ;;  %v858_v55 = vpop.f32.mrb[5].mxu1 }
 0xf0a   :  { %v887_v56 = vadd.f32 %v858_v55, %v201_v52 }
 0xf0b   :  { %v1427_v57 = vmul.f32 -1.442695, %v861_v54 }
 0xf0c   :  { %v1429_v58 = vmul.f32 -1.442695, %v887_v56 }
 0xf0d   :  { %1682 = vpow2.f32 %v1427_v57 }
 0xf0e   :  { %1684 = vpow2.f32 %v1429_v58 }
 0xf17   :  { %v1683_v59 = vpop.eup %1682 }
 0xf18   :  { %v1685_v60 = vpop.eup %1684  ;;  %v865_v61 = vadd.f32 1.0, %v1683_v59 }
 0xf19   :  { %v891_v62 = vadd.f32 1.0, %v1685_v60 }
 0xf1a   :  { %1686 = vrcp.f32 %v865_v61 }
 0xf1b   :  { %1688 = vrcp.f32 %v891_v62 }
 0xf24   :  { %v1687_v63 = vpop.eup %1686 }
 0xf25   :  { %v1689_v0 = vpop.eup %1688  ;;  %v868_v1 = vmul.f32 2.0, %v1687_v63  ;;  %v870_v9 = vmul.f32 %v1687_v63, %v745_v36 }
 0xf26   :  { %v894_v2 = vmul.f32 2.0, %v1689_v0  ;;  %v896_v13 = vmul.f32 %v1689_v0, %v771_v40 }
 0xf27   :  { %v1428_v30 = vadd.f32 -1.0, %v868_v1 }
 0xf28   :  { %v1430_v4 = vadd.f32 -1.0, %v894_v2 }
 0xf29   :  { %872 = vrot.lane.b32.xlu0 %v1428_v30, %s1775_s1 }
 0xf2a   :  { %898 = vrot.lane.b32.xlu1 %v1430_v4, %s1775_s1 }
 0xf9b   :  { %v873_v5 = vpop.permute.xlu0 %872 }
 0xf9c   :  { %v875_v6 = vmul.f32 %v1687_v63, %v873_v5  ;;  %v899_v7 = vpop.permute.xlu1 %898 }
 0xf9d   :  { %v901_v8 = vmul.f32 %v1689_v0, %v899_v7 }
 0xf9e   :  { %877 = vrot.lane.b32.xlu0 %v875_v6, %s1776_s2 }
 0xf9f   :  { %903 = vrot.lane.b32.xlu1 %v901_v8, %s1776_s2 }
0x1010   :  { %v878_v11 = vpop.permute.xlu0 %877 }
0x1011   :  { %v880_v14 = vadd.f32 %v878_v11, %v870_v9  ;;  %v904_v15 = vpop.permute.xlu1 %903 }
0x1012   :  { %v906_v10 = vadd.f32 %v904_v15, %v896_v13 }
0x1013   :  { %1690 = vtanh.f32 %v880_v14 }
0x1014   :  { %1692 = vtanh.f32 %v906_v10 }
0x101d   :  { %v1691_v12 = vpop.eup %1690 }
0x101e   :  { %v1693_v21 = vpop.eup %1692  ;;  %883 = vrot.lane.b32.xlu0 %v1691_v12, %s1775_s1 }
0x101f   :  { %909 = vrot.lane.b32.xlu1 %v1693_v21, %s1775_s1 }
0x1090   :  { %v884_v16 = vpop.permute.xlu0 %883 }
0x1091   :  { %v886_v17 = vmul.f32 %v1687_v63, %v884_v16  ;;  %v910_v33 = vpop.permute.xlu1 %909 }
0x1092   :  { %v912_v18 = vmul.f32 %v1689_v0, %v910_v33  ;;  %v211_v0 = vadd.f32 %v1959_v34, %v1847_v3 }
0x1093   :  { %918 = vrot.lane.b32.xlu1 %v886_v17, %s1775_s1 }
0x1094   :  { %914 = vrot.lane.b32.xlu0 %v912_v18, %s1776_s2 }
0x1105   :  { %v919_v19 = vpop.permute.xlu1 %918 }
0x1106   :  { %v915_v20 = vpop.permute.xlu0 %914 }
0x1107   :  { %v921_v22 = vsel %vm244_vm2, %v915_v20, %v919_v19 }
0x1108   :  { %1431 = vmatmul.mubr.msk.f32.vlgmr.msra.gmra.mrb[12].mxu0 %vm246_vm3, %v921_v22 }
0x1109   :  { %1600 = vmatpush1.bf16.msra.mxu0 %v1859_v25  ;;  %1259 = vmatprep.mubr.f32.mxu0 %v1777_v43 }
0x110a   :  { %1602 = vmatprep.subr.bf16.mxu0 %v1861_v26 }
0x110d   :  { %1604 = vmatpush1.bf16.msra.mxu0 %v1866_v31 }
0x110e   :  { %1606 = vmatprep.subr.bf16.mxu0 %v1870_v32 }
0x1111   :  { %1608 = vmatpush1.bf16.msra.mxu0 %v1874_v37 }
0x1112   :  { %1610 = vmatprep.subr.bf16.mxu0 %v1878_v38 }
0x1115   :  { %1612 = vmatpush1.bf16.msra.mxu0 %v1883_v42 }
0x11db   :  { %v991_v24 = vpop.f32.mrb[12].mxu0 }
0x11dc   :  { %v996_v25 = vadd.f32 %v1908_v48, %v991_v24  ;;  %v993_v27 = vpop.f32.mrb[13].mxu0 }
0x11dd   :  { %v1022_v29 = vadd.f32 %v993_v27, %v206_v23 }
0x11de   :  { %v1432_v36 = vmul.f32 -1.442695, %v996_v25 }
0x11df   :  { %v1434_v26 = vmul.f32 -1.442695, %v1022_v29 }
0x11e0   :  { %1694 = vpow2.f32 %v1432_v36 }
0x11e1   :  { %1696 = vpow2.f32 %v1434_v26 }
0x11ea   :  { %v1695_v31 = vpop.eup %1694 }
0x11eb   :  { %v1697_v32 = vpop.eup %1696  ;;  %v1000_v39 = vadd.f32 1.0, %v1695_v31 }
0x11ec   :  { %v1026_v37 = vadd.f32 1.0, %v1697_v32 }
0x11ed   :  { %1698 = vrcp.f32 %v1000_v39 }
0x11ee   :  { %1700 = vrcp.f32 %v1026_v37 }
0x11f7   :  { %v1699_v38 = vpop.eup %1698 }
0x11f8   :  { %v1701_v42 = vpop.eup %1700  ;;  %v1003_v40 = vmul.f32 2.0, %v1699_v38  ;;  %v1005_v49 = vmul.f32 %v1699_v38, %v880_v14 }
0x11f9   :  { %v1029_v41 = vmul.f32 2.0, %v1701_v42  ;;  %v1031_v51 = vmul.f32 %v1701_v42, %v906_v10 }
0x11fa   :  { %v1433_v35 = vadd.f32 -1.0, %v1003_v40 }
0x11fb   :  { %v1435_v44 = vadd.f32 -1.0, %v1029_v41 }
0x11fc   :  { %1007 = vrot.lane.b32.xlu0 %v1433_v35, %s1775_s1 }
0x11fd   :  { %1033 = vrot.lane.b32.xlu1 %v1435_v44, %s1775_s1 }
0x126e   :  { %v1008_v45 = vpop.permute.xlu0 %1007 }
0x126f   :  { %v1010_v28 = vmul.f32 %v1699_v38, %v1008_v45  ;;  %v1034_v46 = vpop.permute.xlu1 %1033 }
0x1270   :  { %v1036_v47 = vmul.f32 %v1701_v42, %v1034_v46 }
0x1271   :  { %1012 = vrot.lane.b32.xlu0 %v1010_v28, %s1776_s2 }
0x1272   :  { %1038 = vrot.lane.b32.xlu1 %v1036_v47, %s1776_s2 }
0x12e3   :  { %v1013_v50 = vpop.permute.xlu0 %1012 }
0x12e4   :  { %v1015_v52 = vadd.f32 %v1013_v50, %v1005_v49  ;;  %v1039_v53 = vpop.permute.xlu1 %1038 }
0x12e5   :  { %v1041_v54 = vadd.f32 %v1039_v53, %v1031_v51  ;;  %v1293_v53 = vld [vmem:[%s2126_s5 + $0x10] sm:$0xff] }
0x12e6   :  { %1702 = vtanh.f32 %v1015_v52 }
0x12e7   :  { %1704 = vtanh.f32 %v1041_v54 }
0x12f0   :  { %v1703_v55 = vpop.eup %1702 }
0x12f1   :  { %v1705_v56 = vpop.eup %1704  ;;  %1018 = vrot.lane.b32.xlu0 %v1703_v55, %s1775_s1 }
0x12f2   :  { %1044 = vrot.lane.b32.xlu1 %v1705_v56, %s1775_s1  ;;  %v1294_v56 = vld [vmem:[%s2126_s5 + $0x18] sm:$0xff] }
0x1363   :  { %v1019_v57 = vpop.permute.xlu0 %1018 }
0x1364   :  { %v1021_v58 = vmul.f32 %v1699_v38, %v1019_v57  ;;  %v1045_v59 = vpop.permute.xlu1 %1044  ;;  %v1617_v57 = vpack.c.bf16 %v1294_v56, %v1293_v53 }
0x1365   :  { %v1047_v60 = vmul.f32 %v1701_v42, %v1045_v59 }
0x1366   :  { %1053 = vrot.lane.b32.xlu1 %v1021_v58, %s1775_s1 }
0x1367   :  { %1049 = vrot.lane.b32.xlu0 %v1047_v60, %s1776_s2 }
0x13d8   :  { %v1054_v61 = vpop.permute.xlu1 %1053 }
0x13d9   :  { %v1050_v62 = vpop.permute.xlu0 %1049 }
0x13da   :  { %v1056_v63 = vsel %vm244_vm2, %v1050_v62, %v1054_v61  ;;  %v1444_v62 = vld [vmem:[%s2127_s6] ss:$0 sm:$0xff] }
0x13db   :  { %1436 = vmatmul.mubr.msk.f32.vlgmr.msra.gmra.mrb[6].mxu1 %vm246_vm3, %v1056_v63 }
0x13dc   :  { %1482 = vmatprep.mubr.msk.f32.mxu1 %vm1779_vm4, %v1777_v43 }
0x14ae   :  { %v1126_v1 = vpop.f32.mrb[6].mxu1 }
0x14af   :  { %v1131_v2 = vadd.f32 %v1908_v48, %v1126_v1  ;;  %v1128_v30 = vpop.f32.mrb[7].mxu1 }
0x14b0   :  { %v1157_v4 = vadd.f32 %v1128_v30, %v211_v0 }
0x14b1   :  { %v1437_v5 = vmul.f32 -1.442695, %v1131_v2 }
0x14b2   :  { %v1439_v6 = vmul.f32 -1.442695, %v1157_v4 }
0x14b3   :  { %1706 = vpow2.f32 %v1437_v5 }
0x14b4   :  { %1708 = vpow2.f32 %v1439_v6 }
0x14bd   :  { %v1707_v7 = vpop.eup %1706 }
0x14be   :  { %v1709_v8 = vpop.eup %1708  ;;  %v1135_v9 = vadd.f32 1.0, %v1707_v7 }
0x14bf   :  { %v1161_v11 = vadd.f32 1.0, %v1709_v8 }
0x14c0   :  { %1710 = vrcp.f32 %v1135_v9 }
0x14c1   :  { %1712 = vrcp.f32 %v1161_v11 }
0x14ca   :  { %v1711_v13 = vpop.eup %1710 }
0x14cb   :  { %v1713_v14 = vpop.eup %1712  ;;  %v1138_v15 = vmul.f32 2.0, %v1711_v13  ;;  %v1140_v33 = vmul.f32 %v1711_v13, %v1015_v52  ;;  %v1292_v52 = vld [vmem:[%s2126_s5 + $0x8] sm:$0xff] }
0x14cc   :  { %v1164_v10 = vmul.f32 2.0, %v1713_v14  ;;  %v1166_v19 = vmul.f32 %v1713_v14, %v1041_v54  ;;  %v1778_v54 = vmov 0.0|0.0  }
0x14cd   :  { %v1438_v3 = vadd.f32 -1.0, %v1138_v15  ;;  %1613 = vmatprep.subr.bf16.mxu1 %v1778_v54 }
0x14ce   :  { %v1440_v34 = vadd.f32 -1.0, %v1164_v10 }
0x14cf   :  { %1142 = vrot.lane.b32.xlu0 %v1438_v3, %s1775_s1 }
0x14d0   :  { %1168 = vrot.lane.b32.xlu1 %v1440_v34, %s1775_s1 }
0x1541   :  { %v1143_v12 = vpop.permute.xlu0 %1142 }
0x1542   :  { %v1145_v21 = vmul.f32 %v1711_v13, %v1143_v12  ;;  %v1169_v16 = vpop.permute.xlu1 %1168 }
0x1543   :  { %v1171_v17 = vmul.f32 %v1713_v14, %v1169_v16 }
0x1544   :  { %1147 = vrot.lane.b32.xlu0 %v1145_v21, %s1776_s2 }
0x1545   :  { %1173 = vrot.lane.b32.xlu1 %v1171_v17, %s1776_s2 }
0x15b6   :  { %v1148_v18 = vpop.permute.xlu0 %1147 }
0x15b7   :  { %v1150_v20 = vadd.f32 %v1148_v18, %v1140_v33  ;;  %v1174_v22 = vpop.permute.xlu1 %1173 }
0x15b8   :  { %v1176_v23 = vadd.f32 %v1174_v22, %v1166_v19 }
0x15b9   :  { %1714 = vtanh.f32 %v1150_v20 }
0x15ba   :  { %1716 = vtanh.f32 %v1176_v23 }
0x15c3   :  { %v1715_v24 = vpop.eup %1714 }
0x15c4   :  { %v1717_v25 = vpop.eup %1716  ;;  %1153 = vrot.lane.b32.xlu0 %v1715_v24, %s1775_s1 }
0x15c5   :  { %1179 = vrot.lane.b32.xlu1 %v1717_v25, %s1775_s1 }
0x1636   :  { %v1154_v27 = vpop.permute.xlu0 %1153 }
0x1637   :  { %v1156_v29 = vmul.f32 %v1711_v13, %v1154_v27  ;;  %v1180_v36 = vpop.permute.xlu1 %1179 }
0x1638   :  { %v1182_v26 = vmul.f32 %v1713_v14, %v1180_v36 }
0x1639   :  { %1188 = vrot.lane.b32.xlu1 %v1156_v29, %s1775_s1 }
0x163a   :  { %1184 = vrot.lane.b32.xlu0 %v1182_v26, %s1776_s2 }
0x16ab   :  { %v1189_v31 = vpop.permute.xlu1 %1188 }
0x16ac   :  { %v1185_v32 = vpop.permute.xlu0 %1184 }
0x16ad   :  { %v1191_v39 = vsel %vm244_vm2, %v1185_v32, %v1189_v31 }
0x16ae   :  { %1441 = vmatmul.mubr.msk.f32.vlgmr.msra.gmra.mrb[14].mxu0 %vm246_vm3, %v1191_v39 }
0x1781   :  { %v1261_v37 = vpop.f32.mrb[14].mxu0 }
0x1782   :  { %v1265_v38 = vadd.f32 %v1908_v48, %v1261_v37  ;;  %v1263_v42 = vpop.f32.mrb[15].mxu0  ;;  %v1291_v48 = vld [vmem:[%s2126_s5] sm:$0xff]  ;;  %s1780_s5 = smov [#allocation5]  }
0x1783   :  { %v1614_v55 = vpack.c.bf16 %v1292_v52, %v1291_v48  ;;  %s1384_s3 = sshll.u32 %s1780_s5, 4  ;;  %s1385_s3 = int_to_ptr.vmem [resolvable:$true] %s1384_s3 }
0x1784   :  { %v1442_v40 = vmul.f32 -1.442695, %v1265_v38  ;;  %s1746_s21 = scalar_lea.vmem %s1385_s3, 128  ;;  %p1751_p9 = scmp.lt.s32.totalorder %s1385_s3, %s1385_s3 }
0x1785   :  { %1615 = vmatpush3.bf16.msra.mxu1 %v1614_v55  ;;  %p1747_p8 = scmp.ne.s32.totalorder %s1385_s3, %s1746_s21  ;;  %p1752_p10 = scmp.lt.s32.totalorder %s1746_s21, %s1746_s21 }
0x1786   :  { %1718 = vpow2.f32 %v1442_v40  ;;  %1616 = vmatprep.subr.bf16.mxu1 %v1778_v54 }
0x1787   :  { %p1753_p11 = por %p1752_p10, %p1751_p9 }
0x1789   :  { %1618 = vmatpush3.bf16.msra.mxu1 %v1617_v57  ;;  %p1754_p12 = pnand %p1753_p11, %p1747_p8 }
0x1790   :  { %v1719_v41 = vpop.eup %1718 }
0x1791   :  { %v1269_v35 = vadd.f32 1.0, %v1719_v41 }
0x1793   :  { %1720 = vrcp.f32 %v1269_v35 }
0x179d   :  { %v1721_v44 = vpop.eup %1720 }
0x179e   :  { %v1272_v45 = vmul.f32 2.0, %v1721_v44  ;;  %v1274_v49 = vmul.f32 %v1721_v44, %v1150_v20 }
0x17a0   :  { %v1443_v28 = vadd.f32 -1.0, %v1272_v45 }
0x17a2   :  { %1276 = vrot.lane.b32.xlu0 %v1443_v28, %s1775_s1 }
0x1814   :  { %v1277_v46 = vpop.permute.xlu0 %1276 }
0x1815   :  { %v1279_v47 = vmul.f32 %v1721_v44, %v1277_v46 }
0x1817   :  { %1281 = vrot.lane.b32.xlu1 %v1279_v47, %s1776_s2 }
0x1889   :  { %v1282_v50 = vpop.permute.xlu1 %1281 }
0x188a   :  { %v1284_v51 = vadd.f32 %v1282_v50, %v1274_v49 }
0x188c   :  { %1722 = vtanh.f32 %v1284_v51 }
0x1896   :  { %v1723_v58 = vpop.eup %1722 }
0x1897   :  { %1287 = vrot.lane.b32.xlu0 %v1723_v58, %s1775_s1 }
0x1909   :  { %v1288_v59 = vpop.permute.xlu0 %1287 }
0x190a   :  { %v1290_v60 = vmul.f32 %v1721_v44, %v1288_v59 }
0x190c   :  { %1303 = vrot.lane.b32.xlu1 %v1290_v60, %s1776_s2 }
0x197e   :  { %v1304_v61 = vpop.permute.xlu1 %1303 }
0x197f   :  { %1483 = vmatmul.mubr.msk.f32.vlgmr.msra.gmra.mrb[8].mxu1 %vm244_vm2, %v1304_v61 }
0x1a52   :  { %v1373_v43 = vpop.f32.mrb[8].mxu1 }
0x1a53   :  { %v1374_v63 = vadd.f32 %v1444_v62, %v1373_v43  ;;  %v1484_v0 = vpop.f32.mrb[9].mxu1 }
0x1a55   :  { %1377 = vst [vmem:[#allocation5] sm:$0xff] %v1374_v63 }
0x1a56   :  { %1757 = shalt.err (!%p1754_p12)
}
0x1a57   :  { %s1758_s22 = scalar_lea.hbm %s2128_s7, 128 }
0x1a58   :  { %p1759_p13 = scmp.ne.s32.totalorder %s2128_s7, %s1758_s22  ;;  %p1762_p0 = scmp.lt.u32.totalorder %s1758_s22, %s2128_s7 }
0x1a5a   :  { %p1764_p1 = pnand %p1762_p0, %p1759_p13 }
0x1a5c   :  { %1767 = shalt.err (!%p1764_p1)
}
0x1a5d   :  { %1387 = dma.vmem_to_hbm [thread:$0]  %s1385_s3, 128, %s2128_s7, [#allocation4]  }
0x1a5e   :  { %1770 = dma.done.wait [#allocation4], 128  }
0x1a5f   :  { %1771 = vsyncadd [#allocation4], 4294967168 }
0x1a60   :  { %1391 = vsyncpa [#allocation3], 1 }
0x1a61   :  { %1392 = vsyncpa [#allocation4], 1 }

</bundles_post_ra>
